<compile_context>
chip_gen: v6e
topology: v6e:2x2x1
jax: 0.10.0
libtpu: 0.0.40
codegen_flags: <defaults>
</compile_context>

<pallas_src>
import functools
import math

import jax
import jax.numpy as jnp
from jax.experimental import pallas as pl
from jax.experimental.pallas import tpu as pltpu

LN_EPS = 1e-5


def _layernorm(x, gamma, beta):
    mu = jnp.mean(x, axis=-1, keepdims=True)
    var = jnp.mean((x - mu) ** 2, axis=-1, keepdims=True)
    return (x - mu) * jax.lax.rsqrt(var + LN_EPS) * gamma + beta


# Abramowitz & Stegun 7.1.26 erf polynomial (|abs err| <= 1.5e-7).  Uses only
# exp/mul/add/div/where, all of which lower on Mosaic for every TPU gen.
_ERF_P = 0.3275911
_ERF_A = (0.254829592, -0.284496736, 1.421413741, -1.453152027, 1.061405429)


def _erf(x):
    a = jnp.abs(x)
    t = 1.0 / (1.0 + _ERF_P * a)
    poly = t * (_ERF_A[0] + t * (_ERF_A[1] + t * (_ERF_A[2]
               + t * (_ERF_A[3] + t * _ERF_A[4]))))
    y = 1.0 - poly * jnp.exp(-a * a)
    return jnp.where(x >= 0, y, -y)


def _gelu(x, *, approx: bool):
    if approx:
        # tanh approximation (single EUP op); deviates slightly from torch
        # nn.GELU() exact form, hence gated behind a flag.
        c = math.sqrt(2.0 / math.pi)
        return 0.5 * x * (1.0 + jnp.tanh(c * (x + 0.044715 * x * x * x)))
    return 0.5 * x * (1.0 + _erf(x * (1.0 / math.sqrt(2.0))))


def _attn_block_kernel(
    x_ref,
    ln1_g_ref, ln1_b_ref,
    wq_ref, bq_ref, wk_ref, bk_ref, wv_ref, bv_ref,
    wo_ref, bo_ref, wp_ref, bp_ref,
    ln2_g_ref, ln2_b_ref,
    w1_ref, b1_ref, w2_ref, b2_ref,
    o_ref,
    *, num_heads: int, tq: int, tk: int, approx_gelu: bool,
):
    bf16 = jnp.bfloat16
    x = x_ref[0]                                   # (S, E) f32
    S, E = x.shape
    H = num_heads
    D = E // H
    n_q = S // tq
    n_k = S // tk

    # ---- LayerNorm 1 (f32) -> bf16 copy used by every matmul ----
    xn = _layernorm(x, ln1_g_ref[0], ln1_b_ref[0]).astype(bf16)     # (S, E)

    # ---- K / V projections for the full sequence (bf16 VMEM residents) ----
    k = jnp.dot(xn, wk_ref[...], preferred_element_type=jnp.float32) + bk_ref[0]
    v = jnp.dot(xn, wv_ref[...], preferred_element_type=jnp.float32) + bv_ref[0]
    # K in (H, D, S): the score matmul then contracts the RHS's 2nd-to-last
    # dim (natural MXU form, no per-tile transpose).  V stays (H, S, D).
    k = pltpu.einshape("shd->hds", k.reshape(S, H, D)).astype(bf16)
    v = pltpu.einshape("shd->hsd", v.reshape(S, H, D)).astype(bf16)

    for qi in range(n_q):
        q0 = qi * tq
        x_t = x[q0:q0 + tq, :]                     # (tq, E) f32 residual
        xn_t = xn[q0:q0 + tq, :]                   # (tq, E) bf16

        # Q projection for this row tile (1/sqrt(D) folded into wq / bq).
        q_t = jnp.dot(xn_t, wq_ref[...],
                      preferred_element_type=jnp.float32) + bq_ref[0]
        q_t = pltpu.einshape("qhd->hqd", q_t.reshape(tq, H, D)).astype(bf16)

        # ---- flash-style online softmax over KV tiles ----
        m = l = acc = None
        for ki in range(n_k):
            k0 = ki * tk
            s = jnp.einsum("hqd,hds->hqs", q_t, k[:, :, k0:k0 + tk],
                           preferred_element_type=jnp.float32)       # (H,tq,tk)
            if m is None:
                m = jnp.max(s, axis=-1, keepdims=True)
                p = jnp.exp(s - m)
                l = jnp.sum(p, axis=-1, keepdims=True)
                acc = jnp.einsum("hqk,hkd->hqd", p.astype(bf16),
                                 v[:, k0:k0 + tk, :],
                                 preferred_element_type=jnp.float32)
            else:
                m_new = jnp.maximum(m, jnp.max(s, axis=-1, keepdims=True))
                alpha = jnp.exp(m - m_new)
                p = jnp.exp(s - m_new)
                l = alpha * l + jnp.sum(p, axis=-1, keepdims=True)
                acc = alpha * acc + jnp.einsum("hqk,hkd->hqd", p.astype(bf16),
                                               v[:, k0:k0 + tk, :],
                                               preferred_element_type=jnp.float32)
                m = m_new
        ctx = (acc / l).astype(bf16)               # (H, tq, D); exact divide

        # ---- out-projection with the head merge folded into wo (H, D, E) ----
        attn = jnp.einsum("hqd,hde->hqe", ctx, wo_ref[...],
                          preferred_element_type=jnp.float32)        # (H,tq,E)
        attn = jnp.sum(attn, axis=0) + bo_ref[0]                     # (tq, E)
        y = jnp.dot(attn.astype(bf16), wp_ref[...],
                    preferred_element_type=jnp.float32) + bp_ref[0]
        y = y + x_t                                                  # residual 1

        # ---- LayerNorm 2 + MLP (row-tiled; exact GELU by default) ----
        yn = _layernorm(y, ln2_g_ref[0], ln2_b_ref[0]).astype(bf16)
        h1 = jnp.dot(yn, w1_ref[...],
                     preferred_element_type=jnp.float32) + b1_ref[0]
        h1 = _gelu(h1, approx=approx_gelu)
        y2 = jnp.dot(h1.astype(bf16), w2_ref[...],
                     preferred_element_type=jnp.float32) + b2_ref[0]

        o_ref[0, q0:q0 + tq, :] = (y2 + y).astype(o_ref.dtype)       # residual 2


_WEIGHT_NAMES = ["ln1_g", "ln1_b",
                 "wq", "bq", "wk", "bk", "wv", "bv",
                 "wo_h", "bo", "wp", "bp",
                 "ln2_g", "ln2_b",
                 "w1", "b1", "w2", "b2"]


def prepare_params(params, num_heads):
    """One-time parameter prep: split the fused QKV projection, fold 1/sqrt(D)
    into the Q weights/bias, head-reshape wo to (H, D, E), cast weight matrices
    to bf16 (biases / LN params stay f32)."""
    E = params["wqkv"].shape[0]
    D = E // num_heads
    scale = 1.0 / math.sqrt(D)
    wqkv = params["wqkv"].astype(jnp.float32)
    bqkv = params["bqkv"].astype(jnp.float32)
    out = {
        "ln1_g": params["ln1_g"].astype(jnp.float32),
        "ln1_b": params["ln1_b"].astype(jnp.float32),
        "wq": (wqkv[:, 0 * E:1 * E] * scale).astype(jnp.bfloat16),
        "wk": wqkv[:, 1 * E:2 * E].astype(jnp.bfloat16),
        "wv": wqkv[:, 2 * E:3 * E].astype(jnp.bfloat16),
        "bq": bqkv[:, 0 * E:1 * E] * scale,
        "bk": bqkv[:, 1 * E:2 * E],
        "bv": bqkv[:, 2 * E:3 * E],
        # Head-reshaped out-projection: folds the ctx (H,S,D)->(S,E) relayout
        # into a batched matmul + leading-axis sum.
        "wo_h": params["wo"].astype(jnp.bfloat16).reshape(num_heads, D, E),
        "bo": params["bo"].astype(jnp.float32),
        "wp": params["wp"].astype(jnp.bfloat16),
        "bp": params["bp"].astype(jnp.float32),
        "ln2_g": params["ln2_g"].astype(jnp.float32),
        "ln2_b": params["ln2_b"].astype(jnp.float32),
        "w1": params["w1"].astype(jnp.bfloat16),
        "b1": params["b1"].astype(jnp.float32),
        "w2": params["w2"].astype(jnp.bfloat16),
        "b2": params["b2"].astype(jnp.float32),
    }
    return out


def _pick_tile(s, target):
    """Largest divisor of s that is <= target."""
    t = max(1, min(target, s))
    while s % t != 0:
        t -= 1
    return t


def _vmem_limit_bytes(S, E, M, H, tq, tk, weight_bytes):
    D = E // H
    act = 0
    act += 2 * 2 * S * E * 4            # double-buffered x / out blocks
    act += S * E * 2                    # xn (bf16)
    act += 2 * S * E * (4 + 2)          # K/V f32 temporaries + bf16 residents
    act += H * tq * tk * (4 + 4 + 2)    # score tile + probs (f32 + bf16)
    act += H * tq * D * (4 + 2 + 4)     # q tile (f32 + bf16) + ctx accumulator
    act += H * tq * E * 4               # per-head out-proj partials
    act += tq * E * 4 * 4               # attn / y / yn / out row slabs (f32)
    act += tq * M * (4 + 2)             # h1 (f32 + bf16)
    need = weight_bytes + act
    try:
        info = pltpu.get_tpu_info()
        phys = int(getattr(info, "vmem_capacity_bytes", 64 * 1024 * 1024))
    except Exception:
        phys = 64 * 1024 * 1024
    # Headroom for compiler-internal scratch: ~80% of physical on 64 MiB parts
    # (v7x), ~85% on 128 MiB parts (v5e / v6e).
    cap = int(0.80 * phys) if phys <= 64 * 1024 * 1024 else int(0.85 * phys)
    return max(32 * 1024 * 1024, min(cap, int(1.5 * need)))


def attn_block_pallas(x, params, num_heads, *, q_tile=256, kv_tile=512,
                      approx_gelu=False):
    B, S, E = x.shape
    M = params["w1"].shape[1]
    H = num_heads
    assert E % H == 0, "embedding_dim must be divisible by num_heads"
    tq = _pick_tile(S, q_tile)
    tk = _pick_tile(S, kv_tile)

    weight_args = [params[n] for n in _WEIGHT_NAMES]
    # Whole-array VMEM residents: copied once, no per-grid-step double-buffer.
    weight_specs = [pl.BlockSpec(memory_space=pltpu.MemorySpace.VMEM)
                    for _ in weight_args]
    wbytes = sum(int(w.size) * w.dtype.itemsize for w in weight_args)
    vmem_limit = _vmem_limit_bytes(S, E, M, H, tq, tk, wbytes)

    flops = 2 * B * S * (3 * E * E + 2 * S * E + 2 * E * E + 2 * E * M)
    transcendentals = B * (H * S * S + S * M)
    bytes_accessed = 2 * B * S * E * 4 + wbytes
    cost = pl.CostEstimate(flops=flops, transcendentals=transcendentals,
                           bytes_accessed=bytes_accessed)

    kernel = functools.partial(_attn_block_kernel, num_heads=H, tq=tq, tk=tk,
                               approx_gelu=approx_gelu)
    return pl.pallas_call(
        kernel,
        out_shape=jax.ShapeDtypeStruct((B, S, E), jnp.float32),
        grid=(B,),
        in_specs=[pl.BlockSpec((1, S, E), lambda b: (b, 0, 0))] + weight_specs,
        out_specs=pl.BlockSpec((1, S, E), lambda b: (b, 0, 0)),
        compiler_params=pltpu.CompilerParams(
            dimension_semantics=("parallel",),
            vmem_limit_bytes=vmem_limit,
        ),
        cost_estimate=cost,
    )(x, *weight_args)


def attn_block_ref(x, params, num_heads):
    """Pure-JAX f32 reference with identical semantics (raw, un-prepped params)."""
    B, S, E = x.shape
    D = E // num_heads

    def ln(v, g, b):
        mu = jnp.mean(v, axis=-1, keepdims=True)
        var = jnp.mean((v - mu) ** 2, axis=-1, keepdims=True)
        return (v - mu) / jnp.sqrt(var + LN_EPS) * g + b

    res = x
    xn = ln(x, params["ln1_g"][0], params["ln1_b"][0])
    qkv = xn @ params["wqkv"] + params["bqkv"][0]
    q, k, v = jnp.split(qkv, 3, axis=-1)
    q = q.reshape(B, S, num_heads, D).transpose(0, 2, 1, 3) / math.sqrt(D)
    k = k.reshape(B, S, num_heads, D).transpose(0, 2, 1, 3)
    v = v.reshape(B, S, num_heads, D).transpose(0, 2, 1, 3)
    s = jnp.einsum("bhqd,bhkd->bhqk", q, k)
    p = jax.nn.softmax(s, axis=-1)
    a = jnp.einsum("bhqk,bhkd->bhqd", p, v).transpose(0, 2, 1, 3).reshape(B, S, E)
    a = a @ params["wo"] + params["bo"][0]
    y = a @ params["wp"] + params["bp"][0]
    y = y + res
    res = y
    yn = ln(y, params["ln2_g"][0], params["ln2_b"][0])
    h1 = jax.nn.gelu(yn @ params["w1"] + params["b1"][0], approximate=False)
    y2 = h1 @ params["w2"] + params["b2"][0]
    return y2 + res


def init_params(key, E, num_heads, mlp_ratio=4.0):
    M = int(E * mlp_ratio)
    ks = jax.random.split(key, 8)
    scl = 0.05
    return {
        "ln1_g": jnp.ones((1, E), jnp.float32),
        "ln1_b": jnp.zeros((1, E), jnp.float32),
        "wqkv": scl * jax.random.normal(ks[0], (E, 3 * E), jnp.float32),
        "bqkv": scl * jax.random.normal(ks[1], (1, 3 * E), jnp.float32),
        "wo":   scl * jax.random.normal(ks[2], (E, E), jnp.float32),
        "bo":   scl * jax.random.normal(ks[3], (1, E), jnp.float32),
        "wp":   scl * jax.random.normal(ks[4], (E, E), jnp.float32),
        "bp":   jnp.zeros((1, E), jnp.float32),
        "ln2_g": jnp.ones((1, E), jnp.float32),
        "ln2_b": jnp.zeros((1, E), jnp.float32),
        "w1":   scl * jax.random.normal(ks[5], (E, M), jnp.float32),
        "b1":   scl * jax.random.normal(ks[6], (1, M), jnp.float32),
        "w2":   scl * jax.random.normal(ks[7], (M, E), jnp.float32),
        "b2":   jnp.zeros((1, E), jnp.float32),
    }


if __name__ == "__main__":
    B, S, E, H = 2, 8, 32, 4
    key = jax.random.PRNGKey(0)
    kx, kp = jax.random.split(key)
    x = jax.random.normal(kx, (B, S, E), jnp.float32)
    params = init_params(kp, E, H)
    prepped = prepare_params(params, H)

    out = attn_block_pallas(x, prepped, H)
    out = jax.block_until_ready(out)

    ref = attn_block_ref(x, params, H)
    assert out.shape == (B, S, E)
    max_err = float(jnp.max(jnp.abs(out - ref)))
    # bf16 matmul operands => slightly looser tolerance than pure f32.
    assert jnp.allclose(out, ref, rtol=2e-2, atol=2e-2), max_err
    print("KERNEL_OK")
</pallas_src>

<mosaic_0001>
module attributes {stable_mosaic.version = 11 : i64} {
  func.func @_attn_block_kernel(%arg0: i32, %arg1: memref<1x8x32xf32, #tpu.memory_space<vmem>>, %arg2: memref<1x32xf32, #tpu.memory_space<vmem>>, %arg3: memref<1x32xf32, #tpu.memory_space<vmem>>, %arg4: memref<32x32xbf16, #tpu.memory_space<vmem>>, %arg5: memref<1x32xf32, #tpu.memory_space<vmem>>, %arg6: memref<32x32xbf16, #tpu.memory_space<vmem>>, %arg7: memref<1x32xf32, #tpu.memory_space<vmem>>, %arg8: memref<32x32xbf16, #tpu.memory_space<vmem>>, %arg9: memref<1x32xf32, #tpu.memory_space<vmem>>, %arg10: memref<4x8x32xbf16, #tpu.memory_space<vmem>>, %arg11: memref<1x32xf32, #tpu.memory_space<vmem>>, %arg12: memref<32x32xbf16, #tpu.memory_space<vmem>>, %arg13: memref<1x32xf32, #tpu.memory_space<vmem>>, %arg14: memref<1x32xf32, #tpu.memory_space<vmem>>, %arg15: memref<1x32xf32, #tpu.memory_space<vmem>>, %arg16: memref<32x128xbf16, #tpu.memory_space<vmem>>, %arg17: memref<1x128xf32, #tpu.memory_space<vmem>>, %arg18: memref<128x32xbf16, #tpu.memory_space<vmem>>, %arg19: memref<1x32xf32, #tpu.memory_space<vmem>>, %arg20: memref<1x8x32xf32, #tpu.memory_space<vmem>>) attributes {dimension_semantics = [#tpu.dimension_semantics<parallel>], iteration_bounds = array<i64: 2>, scalar_prefetch = 0 : i64, scratch_operands = 0 : i64, tpu.core_type = #tpu.core_type<tc>, window_params = [{transform_indices = @transform_0, window_bounds = array<i64: 1, 8, 32>}, {pipeline_mode = #tpu.pipeline_mode<synchronous>, transform_indices = @transform_1, window_bounds = array<i64: 1, 32>}, {pipeline_mode = #tpu.pipeline_mode<synchronous>, transform_indices = @transform_2, window_bounds = array<i64: 1, 32>}, {pipeline_mode = #tpu.pipeline_mode<synchronous>, transform_indices = @transform_3, window_bounds = array<i64: 32, 32>}, {pipeline_mode = #tpu.pipeline_mode<synchronous>, transform_indices = @transform_4, window_bounds = array<i64: 1, 32>}, {pipeline_mode = #tpu.pipeline_mode<synchronous>, transform_indices = @transform_5, window_bounds = array<i64: 32, 32>}, {pipeline_mode = #tpu.pipeline_mode<synchronous>, transform_indices = @transform_6, window_bounds = array<i64: 1, 32>}, {pipeline_mode = #tpu.pipeline_mode<synchronous>, transform_indices = @transform_7, window_bounds = array<i64: 32, 32>}, {pipeline_mode = #tpu.pipeline_mode<synchronous>, transform_indices = @transform_8, window_bounds = array<i64: 1, 32>}, {pipeline_mode = #tpu.pipeline_mode<synchronous>, transform_indices = @transform_9, window_bounds = array<i64: 4, 8, 32>}, {pipeline_mode = #tpu.pipeline_mode<synchronous>, transform_indices = @transform_10, window_bounds = array<i64: 1, 32>}, {pipeline_mode = #tpu.pipeline_mode<synchronous>, transform_indices = @transform_11, window_bounds = array<i64: 32, 32>}, {pipeline_mode = #tpu.pipeline_mode<synchronous>, transform_indices = @transform_12, window_bounds = array<i64: 1, 32>}, {pipeline_mode = #tpu.pipeline_mode<synchronous>, transform_indices = @transform_13, window_bounds = array<i64: 1, 32>}, {pipeline_mode = #tpu.pipeline_mode<synchronous>, transform_indices = @transform_14, window_bounds = array<i64: 1, 32>}, {pipeline_mode = #tpu.pipeline_mode<synchronous>, transform_indices = @transform_15, window_bounds = array<i64: 32, 128>}, {pipeline_mode = #tpu.pipeline_mode<synchronous>, transform_indices = @transform_16, window_bounds = array<i64: 1, 128>}, {pipeline_mode = #tpu.pipeline_mode<synchronous>, transform_indices = @transform_17, window_bounds = array<i64: 128, 32>}, {pipeline_mode = #tpu.pipeline_mode<synchronous>, transform_indices = @transform_18, window_bounds = array<i64: 1, 32>}, {transform_indices = @transform_19, window_bounds = array<i64: 1, 8, 32>}]} {
    %c0 = arith.constant 0 : index
    %c0_0 = arith.constant 0 : index
    %c0_1 = arith.constant 0 : index
    %0 = vector.load %arg1[%c0, %c0_0, %c0_1] : memref<1x8x32xf32, #tpu.memory_space<vmem>>, vector<1x8x32xf32>
    %1 = vector.shape_cast %0 : vector<1x8x32xf32> to vector<8x32xf32>
    %c0_2 = arith.constant 0 : index
    %c0_3 = arith.constant 0 : index
    %2 = vector.load %arg2[%c0_2, %c0_3] : memref<1x32xf32, #tpu.memory_space<vmem>>, vector<1x32xf32>
    %3 = vector.shape_cast %2 : vector<1x32xf32> to vector<32xf32>
    %c0_4 = arith.constant 0 : index
    %c0_5 = arith.constant 0 : index
    %4 = vector.load %arg3[%c0_4, %c0_5] : memref<1x32xf32, #tpu.memory_space<vmem>>, vector<1x32xf32>
    %5 = vector.shape_cast %4 : vector<1x32xf32> to vector<32xf32>
    %cst = arith.constant dense<0.000000e+00> : vector<8xf32>
    %6 = vector.multi_reduction <add>, %1, %cst [1] : vector<8x32xf32> to vector<8xf32>
    %7 = vector.shape_cast %6 : vector<8xf32> to vector<8x1xf32>
    %cst_6 = arith.constant 3.200000e+01 : f32
    %8 = vector.broadcast %cst_6 : f32 to vector<8x1xf32>
    %9 = arith.divf %7, %8 : vector<8x1xf32>
    %10 = vector.broadcast %9 : vector<8x1xf32> to vector<8x32xf32>
    %11 = arith.subf %1, %10 : vector<8x32xf32>
    %12 = arith.mulf %11, %11 : vector<8x32xf32>
    %cst_7 = arith.constant dense<0.000000e+00> : vector<8xf32>
    %13 = vector.multi_reduction <add>, %12, %cst_7 [1] : vector<8x32xf32> to vector<8xf32>
    %14 = vector.shape_cast %13 : vector<8xf32> to vector<8x1xf32>
    %cst_8 = arith.constant 3.200000e+01 : f32
    %15 = vector.broadcast %cst_8 : f32 to vector<8x1xf32>
    %16 = arith.divf %14, %15 : vector<8x1xf32>
    %17 = vector.broadcast %9 : vector<8x1xf32> to vector<8x32xf32>
    %18 = arith.subf %1, %17 : vector<8x32xf32>
    %cst_9 = arith.constant 9.99999974E-6 : f32
    %19 = vector.broadcast %cst_9 : f32 to vector<8x1xf32>
    %20 = arith.addf %16, %19 : vector<8x1xf32>
    %21 = math.rsqrt %20 : vector<8x1xf32>
    %22 = vector.broadcast %21 : vector<8x1xf32> to vector<8x32xf32>
    %23 = arith.mulf %18, %22 : vector<8x32xf32>
    %24 = vector.shape_cast %3 : vector<32xf32> to vector<1x32xf32>
    %25 = vector.broadcast %24 : vector<1x32xf32> to vector<8x32xf32>
    %26 = arith.mulf %23, %25 : vector<8x32xf32>
    %27 = vector.shape_cast %5 : vector<32xf32> to vector<1x32xf32>
    %28 = vector.broadcast %27 : vector<1x32xf32> to vector<8x32xf32>
    %29 = arith.addf %26, %28 : vector<8x32xf32>
    %30 = arith.truncf %29 : vector<8x32xf32> to vector<8x32xbf16>
    %c0_10 = arith.constant 0 : index
    %c0_11 = arith.constant 0 : index
    %31 = vector.load %arg6[%c0_10, %c0_11] : memref<32x32xbf16, #tpu.memory_space<vmem>>, vector<32x32xbf16>
    %cst_12 = arith.constant dense<0.000000e+00> : vector<8x32xf32>
    %32 = tpu.matmul %30, %31, %cst_12 {dimension_numbers = #tpu.dot_dimension_numbers<[1], [0], [0], [1], [0, 0, 1, 1], [], []>} : vector<8x32xbf16>, vector<32x32xbf16>, vector<8x32xf32> -> vector<8x32xf32>
    %c0_13 = arith.constant 0 : index
    %c0_14 = arith.constant 0 : index
    %33 = vector.load %arg7[%c0_13, %c0_14] : memref<1x32xf32, #tpu.memory_space<vmem>>, vector<1x32xf32>
    %34 = vector.shape_cast %33 : vector<1x32xf32> to vector<32xf32>
    %35 = vector.shape_cast %34 : vector<32xf32> to vector<1x32xf32>
    %36 = vector.broadcast %35 : vector<1x32xf32> to vector<8x32xf32>
    %37 = arith.addf %32, %36 : vector<8x32xf32>
    %c0_15 = arith.constant 0 : index
    %c0_16 = arith.constant 0 : index
    %38 = vector.load %arg8[%c0_15, %c0_16] : memref<32x32xbf16, #tpu.memory_space<vmem>>, vector<32x32xbf16>
    %cst_17 = arith.constant dense<0.000000e+00> : vector<8x32xf32>
    %39 = tpu.matmul %30, %38, %cst_17 {dimension_numbers = #tpu.dot_dimension_numbers<[1], [0], [0], [1], [0, 0, 1, 1], [], []>} : vector<8x32xbf16>, vector<32x32xbf16>, vector<8x32xf32> -> vector<8x32xf32>
    %c0_18 = arith.constant 0 : index
    %c0_19 = arith.constant 0 : index
    %40 = vector.load %arg9[%c0_18, %c0_19] : memref<1x32xf32, #tpu.memory_space<vmem>>, vector<1x32xf32>
    %41 = vector.shape_cast %40 : vector<1x32xf32> to vector<32xf32>
    %42 = vector.shape_cast %41 : vector<32xf32> to vector<1x32xf32>
    %43 = vector.broadcast %42 : vector<1x32xf32> to vector<8x32xf32>
    %44 = arith.addf %39, %43 : vector<8x32xf32>
    %45 = vector.shape_cast %37 : vector<8x32xf32> to vector<8x4x8xf32>
    %46 = tpu.transpose %45, [1, 2, 0] : vector<8x4x8xf32> -> vector<4x8x8xf32>
    %47 = arith.truncf %46 : vector<4x8x8xf32> to vector<4x8x8xbf16>
    %48 = vector.shape_cast %44 : vector<8x32xf32> to vector<8x4x8xf32>
    %49 = tpu.transpose %48, [1, 0, 2] : vector<8x4x8xf32> -> vector<4x8x8xf32>
    %50 = arith.truncf %49 : vector<4x8x8xf32> to vector<4x8x8xbf16>
    %c0_20 = arith.constant 0 : index
    %c0_21 = arith.constant 0 : index
    %51 = vector.load %arg4[%c0_20, %c0_21] : memref<32x32xbf16, #tpu.memory_space<vmem>>, vector<32x32xbf16>
    %cst_22 = arith.constant dense<0.000000e+00> : vector<8x32xf32>
    %52 = tpu.matmul %30, %51, %cst_22 {dimension_numbers = #tpu.dot_dimension_numbers<[1], [0], [0], [1], [0, 0, 1, 1], [], []>} : vector<8x32xbf16>, vector<32x32xbf16>, vector<8x32xf32> -> vector<8x32xf32>
    %c0_23 = arith.constant 0 : index
    %c0_24 = arith.constant 0 : index
    %53 = vector.load %arg5[%c0_23, %c0_24] : memref<1x32xf32, #tpu.memory_space<vmem>>, vector<1x32xf32>
    %54 = vector.shape_cast %53 : vector<1x32xf32> to vector<32xf32>
    %55 = vector.shape_cast %54 : vector<32xf32> to vector<1x32xf32>
    %56 = vector.broadcast %55 : vector<1x32xf32> to vector<8x32xf32>
    %57 = arith.addf %52, %56 : vector<8x32xf32>
    %58 = vector.shape_cast %57 : vector<8x32xf32> to vector<8x4x8xf32>
    %59 = tpu.transpose %58, [1, 0, 2] : vector<8x4x8xf32> -> vector<4x8x8xf32>
    %60 = arith.truncf %59 : vector<4x8x8xf32> to vector<4x8x8xbf16>
    "tpu.trace_start"() <{level = 10 : i32, message = "hqd,hds->hqs"}> : () -> ()
    %cst_25 = arith.constant dense<0.000000e+00> : vector<4x8x8xf32>
    %61 = tpu.matmul %60, %47, %cst_25 {dimension_numbers = #tpu.dot_dimension_numbers<[2], [1], [1], [2], [0, 0, 0, 1, 1, 2], [0], [0]>} : vector<4x8x8xbf16>, vector<4x8x8xbf16>, vector<4x8x8xf32> -> vector<4x8x8xf32>
    "tpu.trace_stop"() : () -> ()
    %cst_26 = arith.constant dense<0xFF800000> : vector<4x8xf32>
    %62 = vector.multi_reduction <maximumf>, %61, %cst_26 [2] : vector<4x8x8xf32> to vector<4x8xf32>
    %63 = vector.shape_cast %62 : vector<4x8xf32> to vector<4x8x1xf32>
    %64 = vector.broadcast %63 : vector<4x8x1xf32> to vector<4x8x8xf32>
    %65 = arith.subf %61, %64 : vector<4x8x8xf32>
    %66 = math.exp %65 : vector<4x8x8xf32>
    %cst_27 = arith.constant dense<0.000000e+00> : vector<4x8xf32>
    %67 = vector.multi_reduction <add>, %66, %cst_27 [2] : vector<4x8x8xf32> to vector<4x8xf32>
    %68 = vector.shape_cast %67 : vector<4x8xf32> to vector<4x8x1xf32>
    %69 = arith.truncf %66 : vector<4x8x8xf32> to vector<4x8x8xbf16>
    "tpu.trace_start"() <{level = 10 : i32, message = "hqk,hkd->hqd"}> : () -> ()
    %cst_28 = arith.constant dense<0.000000e+00> : vector<4x8x8xf32>
    %70 = tpu.matmul %69, %50, %cst_28 {dimension_numbers = #tpu.dot_dimension_numbers<[2], [1], [1], [2], [0, 0, 0, 1, 1, 2], [0], [0]>} : vector<4x8x8xbf16>, vector<4x8x8xbf16>, vector<4x8x8xf32> -> vector<4x8x8xf32>
    "tpu.trace_stop"() : () -> ()
    %71 = vector.broadcast %68 : vector<4x8x1xf32> to vector<4x8x8xf32>
    %72 = arith.divf %70, %71 : vector<4x8x8xf32>
    %73 = arith.truncf %72 : vector<4x8x8xf32> to vector<4x8x8xbf16>
    %c0_29 = arith.constant 0 : index
    %c0_30 = arith.constant 0 : index
    %c0_31 = arith.constant 0 : index
    %74 = vector.load %arg10[%c0_29, %c0_30, %c0_31] : memref<4x8x32xbf16, #tpu.memory_space<vmem>>, vector<4x8x32xbf16>
    "tpu.trace_start"() <{level = 10 : i32, message = "hqd,hde->hqe"}> : () -> ()
    %cst_32 = arith.constant dense<0.000000e+00> : vector<4x8x32xf32>
    %75 = tpu.matmul %73, %74, %cst_32 {dimension_numbers = #tpu.dot_dimension_numbers<[2], [1], [1], [2], [0, 0, 0, 1, 1, 2], [0], [0]>} : vector<4x8x8xbf16>, vector<4x8x32xbf16>, vector<4x8x32xf32> -> vector<4x8x32xf32>
    "tpu.trace_stop"() : () -> ()
    %cst_33 = arith.constant dense<0.000000e+00> : vector<8x32xf32>
    %76 = vector.multi_reduction <add>, %75, %cst_33 [0] : vector<4x8x32xf32> to vector<8x32xf32>
    %c0_34 = arith.constant 0 : index
    %c0_35 = arith.constant 0 : index
    %77 = vector.load %arg11[%c0_34, %c0_35] : memref<1x32xf32, #tpu.memory_space<vmem>>, vector<1x32xf32>
    %78 = vector.shape_cast %77 : vector<1x32xf32> to vector<32xf32>
    %79 = vector.shape_cast %78 : vector<32xf32> to vector<1x32xf32>
    %80 = vector.broadcast %79 : vector<1x32xf32> to vector<8x32xf32>
    %81 = arith.addf %76, %80 : vector<8x32xf32>
    %82 = arith.truncf %81 : vector<8x32xf32> to vector<8x32xbf16>
    %c0_36 = arith.constant 0 : index
    %c0_37 = arith.constant 0 : index
    %83 = vector.load %arg12[%c0_36, %c0_37] : memref<32x32xbf16, #tpu.memory_space<vmem>>, vector<32x32xbf16>
    %cst_38 = arith.constant dense<0.000000e+00> : vector<8x32xf32>
    %84 = tpu.matmul %82, %83, %cst_38 {dimension_numbers = #tpu.dot_dimension_numbers<[1], [0], [0], [1], [0, 0, 1, 1], [], []>} : vector<8x32xbf16>, vector<32x32xbf16>, vector<8x32xf32> -> vector<8x32xf32>
    %c0_39 = arith.constant 0 : index
    %c0_40 = arith.constant 0 : index
    %85 = vector.load %arg13[%c0_39, %c0_40] : memref<1x32xf32, #tpu.memory_space<vmem>>, vector<1x32xf32>
    %86 = vector.shape_cast %85 : vector<1x32xf32> to vector<32xf32>
    %87 = vector.shape_cast %86 : vector<32xf32> to vector<1x32xf32>
    %88 = vector.broadcast %87 : vector<1x32xf32> to vector<8x32xf32>
    %89 = arith.addf %84, %88 : vector<8x32xf32>
    %90 = arith.addf %89, %1 : vector<8x32xf32>
    %c0_41 = arith.constant 0 : index
    %c0_42 = arith.constant 0 : index
    %91 = vector.load %arg14[%c0_41, %c0_42] : memref<1x32xf32, #tpu.memory_space<vmem>>, vector<1x32xf32>
    %92 = vector.shape_cast %91 : vector<1x32xf32> to vector<32xf32>
    %c0_43 = arith.constant 0 : index
    %c0_44 = arith.constant 0 : index
    %93 = vector.load %arg15[%c0_43, %c0_44] : memref<1x32xf32, #tpu.memory_space<vmem>>, vector<1x32xf32>
    %94 = vector.shape_cast %93 : vector<1x32xf32> to vector<32xf32>
    %cst_45 = arith.constant dense<0.000000e+00> : vector<8xf32>
    %95 = vector.multi_reduction <add>, %90, %cst_45 [1] : vector<8x32xf32> to vector<8xf32>
    %96 = vector.shape_cast %95 : vector<8xf32> to vector<8x1xf32>
    %cst_46 = arith.constant 3.200000e+01 : f32
    %97 = vector.broadcast %cst_46 : f32 to vector<8x1xf32>
    %98 = arith.divf %96, %97 : vector<8x1xf32>
    %99 = vector.broadcast %98 : vector<8x1xf32> to vector<8x32xf32>
    %100 = arith.subf %90, %99 : vector<8x32xf32>
    %101 = arith.mulf %100, %100 : vector<8x32xf32>
    %cst_47 = arith.constant dense<0.000000e+00> : vector<8xf32>
    %102 = vector.multi_reduction <add>, %101, %cst_47 [1] : vector<8x32xf32> to vector<8xf32>
    %103 = vector.shape_cast %102 : vector<8xf32> to vector<8x1xf32>
    %cst_48 = arith.constant 3.200000e+01 : f32
    %104 = vector.broadcast %cst_48 : f32 to vector<8x1xf32>
    %105 = arith.divf %103, %104 : vector<8x1xf32>
    %106 = vector.broadcast %98 : vector<8x1xf32> to vector<8x32xf32>
    %107 = arith.subf %90, %106 : vector<8x32xf32>
    %cst_49 = arith.constant 9.99999974E-6 : f32
    %108 = vector.broadcast %cst_49 : f32 to vector<8x1xf32>
    %109 = arith.addf %105, %108 : vector<8x1xf32>
    %110 = math.rsqrt %109 : vector<8x1xf32>
    %111 = vector.broadcast %110 : vector<8x1xf32> to vector<8x32xf32>
    %112 = arith.mulf %107, %111 : vector<8x32xf32>
    %113 = vector.shape_cast %92 : vector<32xf32> to vector<1x32xf32>
    %114 = vector.broadcast %113 : vector<1x32xf32> to vector<8x32xf32>
    %115 = arith.mulf %112, %114 : vector<8x32xf32>
    %116 = vector.shape_cast %94 : vector<32xf32> to vector<1x32xf32>
    %117 = vector.broadcast %116 : vector<1x32xf32> to vector<8x32xf32>
    %118 = arith.addf %115, %117 : vector<8x32xf32>
    %119 = arith.truncf %118 : vector<8x32xf32> to vector<8x32xbf16>
    %c0_50 = arith.constant 0 : index
    %c0_51 = arith.constant 0 : index
    %120 = vector.load %arg16[%c0_50, %c0_51] : memref<32x128xbf16, #tpu.memory_space<vmem>>, vector<32x128xbf16>
    %cst_52 = arith.constant dense<0.000000e+00> : vector<8x128xf32>
    %121 = tpu.matmul %119, %120, %cst_52 {dimension_numbers = #tpu.dot_dimension_numbers<[1], [0], [0], [1], [0, 0, 1, 1], [], []>} : vector<8x32xbf16>, vector<32x128xbf16>, vector<8x128xf32> -> vector<8x128xf32>
    %c0_53 = arith.constant 0 : index
    %c0_54 = arith.constant 0 : index
    %122 = vector.load %arg17[%c0_53, %c0_54] : memref<1x128xf32, #tpu.memory_space<vmem>>, vector<1x128xf32>
    %123 = vector.shape_cast %122 : vector<1x128xf32> to vector<128xf32>
    %124 = vector.shape_cast %123 : vector<128xf32> to vector<1x128xf32>
    %125 = vector.broadcast %124 : vector<1x128xf32> to vector<8x128xf32>
    %126 = arith.addf %121, %125 : vector<8x128xf32>
    %cst_55 = arith.constant 5.000000e-01 : f32
    %127 = vector.broadcast %cst_55 : f32 to vector<8x128xf32>
    %128 = arith.mulf %127, %126 : vector<8x128xf32>
    %cst_56 = arith.constant 0.707106769 : f32
    %129 = vector.broadcast %cst_56 : f32 to vector<8x128xf32>
    %130 = arith.mulf %126, %129 : vector<8x128xf32>
    %131 = math.absf %130 : vector<8x128xf32>
    %cst_57 = arith.constant 0.327591091 : f32
    %132 = vector.broadcast %cst_57 : f32 to vector<8x128xf32>
    %133 = arith.mulf %132, %131 : vector<8x128xf32>
    %cst_58 = arith.constant 1.000000e+00 : f32
    %134 = vector.broadcast %cst_58 : f32 to vector<8x128xf32>
    %135 = arith.addf %134, %133 : vector<8x128xf32>
    %cst_59 = arith.constant 1.000000e+00 : f32
    %136 = vector.broadcast %cst_59 : f32 to vector<8x128xf32>
    %137 = arith.divf %136, %135 : vector<8x128xf32>
    %cst_60 = arith.constant 1.06140542 : f32
    %138 = vector.broadcast %cst_60 : f32 to vector<8x128xf32>
    %139 = arith.mulf %137, %138 : vector<8x128xf32>
    %cst_61 = arith.constant -1.45315206 : f32
    %140 = vector.broadcast %cst_61 : f32 to vector<8x128xf32>
    %141 = arith.addf %140, %139 : vector<8x128xf32>
    %142 = arith.mulf %137, %141 : vector<8x128xf32>
    %cst_62 = arith.constant 1.42141378 : f32
    %143 = vector.broadcast %cst_62 : f32 to vector<8x128xf32>
    %144 = arith.addf %143, %142 : vector<8x128xf32>
    %145 = arith.mulf %137, %144 : vector<8x128xf32>
    %cst_63 = arith.constant -0.284496725 : f32
    %146 = vector.broadcast %cst_63 : f32 to vector<8x128xf32>
    %147 = arith.addf %146, %145 : vector<8x128xf32>
    %148 = arith.mulf %137, %147 : vector<8x128xf32>
    %cst_64 = arith.constant 0.254829586 : f32
    %149 = vector.broadcast %cst_64 : f32 to vector<8x128xf32>
    %150 = arith.addf %149, %148 : vector<8x128xf32>
    %151 = arith.mulf %137, %150 : vector<8x128xf32>
    %cst_65 = arith.constant 0.000000e+00 : f32
    %152 = vector.broadcast %cst_65 : f32 to vector<8x128xf32>
    %153 = arith.subf %152, %131 : vector<8x128xf32>
    %154 = arith.mulf %153, %131 : vector<8x128xf32>
    %155 = math.exp %154 : vector<8x128xf32>
    %156 = arith.mulf %151, %155 : vector<8x128xf32>
    %cst_66 = arith.constant 1.000000e+00 : f32
    %157 = vector.broadcast %cst_66 : f32 to vector<8x128xf32>
    %158 = arith.subf %157, %156 : vector<8x128xf32>
    %cst_67 = arith.constant 0.000000e+00 : f32
    %159 = vector.broadcast %cst_67 : f32 to vector<8x128xf32>
    %160 = arith.cmpf oge, %130, %159 : vector<8x128xf32>
    %cst_68 = arith.constant 0.000000e+00 : f32
    %161 = vector.broadcast %cst_68 : f32 to vector<8x128xf32>
    %162 = arith.subf %161, %158 : vector<8x128xf32>
    %163 = arith.select %160, %158, %162 : vector<8x128xi1>, vector<8x128xf32>
    %cst_69 = arith.constant 1.000000e+00 : f32
    %164 = vector.broadcast %cst_69 : f32 to vector<8x128xf32>
    %165 = arith.addf %164, %163 : vector<8x128xf32>
    %166 = arith.mulf %128, %165 : vector<8x128xf32>
    %167 = arith.truncf %166 : vector<8x128xf32> to vector<8x128xbf16>
    %c0_70 = arith.constant 0 : index
    %c0_71 = arith.constant 0 : index
    %168 = vector.load %arg18[%c0_70, %c0_71] : memref<128x32xbf16, #tpu.memory_space<vmem>>, vector<128x32xbf16>
    %cst_72 = arith.constant dense<0.000000e+00> : vector<8x32xf32>
    %169 = tpu.matmul %167, %168, %cst_72 {dimension_numbers = #tpu.dot_dimension_numbers<[1], [0], [0], [1], [0, 0, 1, 1], [], []>} : vector<8x128xbf16>, vector<128x32xbf16>, vector<8x32xf32> -> vector<8x32xf32>
    %c0_73 = arith.constant 0 : index
    %c0_74 = arith.constant 0 : index
    %170 = vector.load %arg19[%c0_73, %c0_74] : memref<1x32xf32, #tpu.memory_space<vmem>>, vector<1x32xf32>
    %171 = vector.shape_cast %170 : vector<1x32xf32> to vector<32xf32>
    %172 = vector.shape_cast %171 : vector<32xf32> to vector<1x32xf32>
    %173 = vector.broadcast %172 : vector<1x32xf32> to vector<8x32xf32>
    %174 = arith.addf %169, %173 : vector<8x32xf32>
    %175 = arith.addf %174, %90 : vector<8x32xf32>
    %c0_75 = arith.constant 0 : index
    %c0_76 = arith.constant 0 : index
    %c0_77 = arith.constant 0 : index
    %176 = vector.load %arg20[%c0_75, %c0_76, %c0_77] : memref<1x8x32xf32, #tpu.memory_space<vmem>>, vector<1x8x32xf32>
    %177 = vector.shape_cast %176 : vector<1x8x32xf32> to vector<8x32xf32>
    %178 = vector.shape_cast %175 : vector<8x32xf32> to vector<1x8x32xf32>
    tpu.vector_store %arg20[%c0_75, %c0_76, %c0_77], %178 {strides = array<i32>} : memref<1x8x32xf32, #tpu.memory_space<vmem>>, vector<1x8x32xf32>,
    return
  }
  func.func @transform_0(%arg0: i32) -> (i32, i32, i32) {
    %c0_i32 = arith.constant 0 : i32
    %c0_i32_0 = arith.constant 0 : i32
    %c0_i32_1 = arith.constant 0 : i32
    return %arg0, %c0_i32, %c0_i32_0 : i32, i32, i32
  }
  func.func @transform_1(%arg0: i32) -> (i32, i32) {
    %c0_i32 = arith.constant 0 : i32
    %c0_i32_0 = arith.constant 0 : i32
    %c0_i32_1 = arith.constant 0 : i32
    return %c0_i32, %c0_i32_0 : i32, i32
  }
  func.func @transform_2(%arg0: i32) -> (i32, i32) {
    %c0_i32 = arith.constant 0 : i32
    %c0_i32_0 = arith.constant 0 : i32
    %c0_i32_1 = arith.constant 0 : i32
    return %c0_i32, %c0_i32_0 : i32, i32
  }
  func.func @transform_3(%arg0: i32) -> (i32, i32) {
    %c0_i32 = arith.constant 0 : i32
    %c0_i32_0 = arith.constant 0 : i32
    %c0_i32_1 = arith.constant 0 : i32
    return %c0_i32, %c0_i32_0 : i32, i32
  }
  func.func @transform_4(%arg0: i32) -> (i32, i32) {
    %c0_i32 = arith.constant 0 : i32
    %c0_i32_0 = arith.constant 0 : i32
    %c0_i32_1 = arith.constant 0 : i32
    return %c0_i32, %c0_i32_0 : i32, i32
  }
  func.func @transform_5(%arg0: i32) -> (i32, i32) {
    %c0_i32 = arith.constant 0 : i32
    %c0_i32_0 = arith.constant 0 : i32
    %c0_i32_1 = arith.constant 0 : i32
    return %c0_i32, %c0_i32_0 : i32, i32
  }
  func.func @transform_6(%arg0: i32) -> (i32, i32) {
    %c0_i32 = arith.constant 0 : i32
    %c0_i32_0 = arith.constant 0 : i32
    %c0_i32_1 = arith.constant 0 : i32
    return %c0_i32, %c0_i32_0 : i32, i32
  }
  func.func @transform_7(%arg0: i32) -> (i32, i32) {
    %c0_i32 = arith.constant 0 : i32
    %c0_i32_0 = arith.constant 0 : i32
    %c0_i32_1 = arith.constant 0 : i32
    return %c0_i32, %c0_i32_0 : i32, i32
  }
  func.func @transform_8(%arg0: i32) -> (i32, i32) {
    %c0_i32 = arith.constant 0 : i32
    %c0_i32_0 = arith.constant 0 : i32
    %c0_i32_1 = arith.constant 0 : i32
    return %c0_i32, %c0_i32_0 : i32, i32
  }
  func.func @transform_9(%arg0: i32) -> (i32, i32, i32) {
    %c0_i32 = arith.constant 0 : i32
    %c0_i32_0 = arith.constant 0 : i32
    %c0_i32_1 = arith.constant 0 : i32
    %c0_i32_2 = arith.constant 0 : i32
    return %c0_i32, %c0_i32_0, %c0_i32_1 : i32, i32, i32
  }
  func.func @transform_10(%arg0: i32) -> (i32, i32) {
    %c0_i32 = arith.constant 0 : i32
    %c0_i32_0 = arith.constant 0 : i32
    %c0_i32_1 = arith.constant 0 : i32
    return %c0_i32, %c0_i32_0 : i32, i32
  }
  func.func @transform_11(%arg0: i32) -> (i32, i32) {
    %c0_i32 = arith.constant 0 : i32
    %c0_i32_0 = arith.constant 0 : i32
    %c0_i32_1 = arith.constant 0 : i32
    return %c0_i32, %c0_i32_0 : i32, i32
  }
  func.func @transform_12(%arg0: i32) -> (i32, i32) {
    %c0_i32 = arith.constant 0 : i32
    %c0_i32_0 = arith.constant 0 : i32
    %c0_i32_1 = arith.constant 0 : i32
    return %c0_i32, %c0_i32_0 : i32, i32
  }
  func.func @transform_13(%arg0: i32) -> (i32, i32) {
    %c0_i32 = arith.constant 0 : i32
    %c0_i32_0 = arith.constant 0 : i32
    %c0_i32_1 = arith.constant 0 : i32
    return %c0_i32, %c0_i32_0 : i32, i32
  }
  func.func @transform_14(%arg0: i32) -> (i32, i32) {
    %c0_i32 = arith.constant 0 : i32
    %c0_i32_0 = arith.constant 0 : i32
    %c0_i32_1 = arith.constant 0 : i32
    return %c0_i32, %c0_i32_0 : i32, i32
  }
  func.func @transform_15(%arg0: i32) -> (i32, i32) {
    %c0_i32 = arith.constant 0 : i32
    %c0_i32_0 = arith.constant 0 : i32
    %c0_i32_1 = arith.constant 0 : i32
    return %c0_i32, %c0_i32_0 : i32, i32
  }
  func.func @transform_16(%arg0: i32) -> (i32, i32) {
    %c0_i32 = arith.constant 0 : i32
    %c0_i32_0 = arith.constant 0 : i32
    %c0_i32_1 = arith.constant 0 : i32
    return %c0_i32, %c0_i32_0 : i32, i32
  }
  func.func @transform_17(%arg0: i32) -> (i32, i32) {
    %c0_i32 = arith.constant 0 : i32
    %c0_i32_0 = arith.constant 0 : i32
    %c0_i32_1 = arith.constant 0 : i32
    return %c0_i32, %c0_i32_0 : i32, i32
  }
  func.func @transform_18(%arg0: i32) -> (i32, i32) {
    %c0_i32 = arith.constant 0 : i32
    %c0_i32_0 = arith.constant 0 : i32
    %c0_i32_1 = arith.constant 0 : i32
    return %c0_i32, %c0_i32_0 : i32, i32
  }
  func.func @transform_19(%arg0: i32) -> (i32, i32, i32) {
    %c0_i32 = arith.constant 0 : i32
    %c0_i32_0 = arith.constant 0 : i32
    %c0_i32_1 = arith.constant 0 : i32
    return %arg0, %c0_i32, %c0_i32_0 : i32, i32, i32
  }
}

</mosaic_0001>

<bundles_post_ra>
// kernel: tpu_custom_call.1
= control target key start
LH: loop header
LB: loop body
LE: loop exit
PB: predicated region body
PF: predicated region fallthrough
CT: control target
= control target key end

     0   :  { %s4312_s0 = inlined_call_operand.vmem [shape: f32[2,8,32], index: 0, kind: input, shape index: {}]   ;;  %s4313_s1 = inlined_call_operand.hbm [shape: f32[1,32], index: 1, kind: input, shape index: {}]   ;;  %s4314_s2 = inlined_call_operand.hbm [shape: f32[1,32], index: 2, kind: input, shape index: {}]   ;;  %s4315_s3 = inlined_call_operand.vmem [shape: bf16[32,32], index: 3, kind: input, shape index: {}]   ;;  %s4316_s4 = inlined_call_operand.hbm [shape: f32[1,32], index: 4, kind: input, shape index: {}]   ;;  %s4317_s5 = inlined_call_operand.vmem [shape: bf16[32,32], index: 5, kind: input, shape index: {}]   ;;  %s4318_s6 = inlined_call_operand.hbm [shape: f32[1,32], index: 6, kind: input, shape index: {}]   ;;  %s4319_s7 = inlined_call_operand.vmem [shape: bf16[32,32], index: 7, kind: input, shape index: {}]   ;;  %s4320_s8 = inlined_call_operand.hbm [shape: f32[1,32], index: 8, kind: input, shape index: {}]   ;;  %s4321_s9 = inlined_call_operand.vmem [shape: bf16[4,8,32], index: 9, kind: input, shape index: {}]   ;;  %s4322_s10 = inlined_call_operand.vmem [shape: f32[1,32], index: 10, kind: input, shape index: {}]   ;;  %s4323_s11 = inlined_call_operand.vmem [shape: bf16[32,32], index: 11, kind: input, shape index: {}]   ;;  %s4324_s12 = inlined_call_operand.vmem [shape: f32[1,32], index: 12, kind: input, shape index: {}]   ;;  %s4325_s13 = inlined_call_operand.vmem [shape: f32[1,32], index: 13, kind: input, shape index: {}]   ;;  %s4326_s14 = inlined_call_operand.vmem [shape: f32[1,32], index: 14, kind: input, shape index: {}]   ;;  %s4327_s15 = inlined_call_operand.hbm [shape: bf16[32,128], index: 15, kind: input, shape index: {}]   ;;  %s4328_s16 = inlined_call_operand.vmem [shape: f32[1,128], index: 16, kind: input, shape index: {}]   ;;  %s4329_s17 = inlined_call_operand.vmem [shape: bf16[128,32], index: 17, kind: input, shape index: {}]   ;;  %s4330_s18 = inlined_call_operand.vmem [shape: f32[1,32], index: 18, kind: input, shape index: {}]   ;;  %s4331_s19 = inlined_call_operand.hbm [shape: f32[2,8,32], index: 19, kind: output, shape index: {}]  }
   0x1   :  { %4343 = sst [smem:[#allocation25_spill]] %s4312_s0 }
   0x2   :  { %4344 = sst [smem:[#allocation26_spill]] %s4313_s1 }
   0x3   :  { %4345 = sst [smem:[#allocation27_spill]] %s4314_s2 }
   0x4   :  { %4346 = sst [smem:[#allocation28_spill]] %s4315_s3 }
   0x5   :  { %4347 = sst [smem:[#allocation29_spill]] %s4318_s6 }
   0x6   :  { %4348 = sst [smem:[#allocation30_spill]] %s4331_s19 }
   0x7   :  { %24 = vsyncpa [#allocation3], 0 }
   0x8   :  { %25 = vsyncpa [#allocation6], 0 }
   0x9   :  { %26 = vsyncpa [#allocation9], 0 }
   0xa   :  { %27 = vsyncpa [#allocation12], 0 }
   0xb   :  { %28 = vsyncpa [#allocation4], 0 }
   0xc   :  { %30 = vsyncpa [#allocation4 + $0x1], 0  ;;  %s3817_s0 = smov 0   ;;  %s3819_s30 = smov 0  }
   0xd   :  { %s3821_s20 = smov 0   ;;  %s3823_s21 = smov 0  }
   0xe LB: > { %4349 = sst [smem:[#allocation19_spill]] %s3687_s0  ;;  %s3838_s1 = sadd.s32 4294967295, %s3699_s21   ;;  %s3699_s21 = sphi %s3823_s21, %s4380_s21   ;;  %s3695_s20 = sphi %s3821_s20, %s4385_s20   ;;  %s3691_s30 = sphi %s3819_s30, %s4384_s30   ;;  %s3687_s0 = sphi %s3817_s0, %s4383_s0  }
   0xf   : > { %4350 = sst [smem:[#allocation20_spill]] %s3695_s20  ;;  %s3063_s22 = sadd.s32 4294967294, %s3699_s21  }
  0x10   : > { %4351 = sst [smem:[#allocation21_spill]] %s3699_s21  ;;  %s3842_s2 = sadd.s32 1, %s3699_s21  }
  0x11   : > { %4352 = sst [smem:[#allocation22_spill]] %s3842_s2  ;;  %s447_s23 = sadd.s32 1, %s3695_s20 }
  0x12   : > { %s444_s24 = ssub.s32 %s3699_s21, %s3842_s2  ;;  %p457_p0 = scmp.ne.s32.totalorder %s3695_s20, %s3691_s30 }
  0x13   : > { %p445_p1 = scmp.eq.s32.totalorder %s444_s24, 0  ;;  %p458_p2 = scmp.eq.s32.totalorder %s3838_s1, 1 }
  0x14   : > { %p463_p3 = scmp.ne.s32.totalorder %s3691_s30, %s3687_s0  ;;  %p464_p4 = scmp.eq.s32.totalorder %s3063_s22, 1 }
  0x15   : > { %s3853_s25 = scalar_select %p445_p1, %s3695_s20, %s447_s23  }
  0x16   : > { %p3855_p5 = por %p458_p2, %p457_p0  ;;  %p3859_p6 = por %p464_p4, %p463_p3 }
  0x17   : > { %4353 = sst [smem:[#allocation23_spill]] %s3853_s25  ;;  %p3064_p7 = scmp.ge.s32.totalorder %s3699_s21, 1 }
  0x18   : > { %s4354_s3 = scalar_select %p3855_p5, 1, 0 }
  0x19   : > { %s4355_s26 = scalar_select %p3859_p6, 1, 0 }
  0x1a   : > { %p471_p8 = scmp.lt.s32.totalorder %s3699_s21, 3  ;;  %p4339_p9 = scmp.eq.s32.totalorder %s3838_s1, 0 }
  0x1b   : > { %4356 = sst [smem:[#allocation24_spill]] %s4355_s26  ;;  %s3701_s28 = smov [#allocation5]  }
  0x1c   : > { %p3866_p10 = pnand %p3064_p7, %p471_p8  ;;  %s495_s29 = sshll.u32 %s3701_s28, 4  ;;  %s496_s29 = int_to_ptr.vmem [resolvable:$true] %s495_s29 }
  0x1d   : > { %s3702_s22 = smov [#allocation8]   ;;  %s3703_s25 = smov [#allocation2]  }
  0x1e   : > { %s4357_s27 = scalar_select %p3866_p10, 1, 0 }
  0x1f   : > { %p3341_p11 = pneg %p3866_p10  ;;  %s523_s23 = sshll.u32 %s3702_s22, 4  ;;  %s524_s23 = int_to_ptr.vmem [resolvable:$true] %s523_s23 }
  0x20   : > { %s484_s20 = sshll.u32 %s3703_s25, 4  ;;  %s3478_s28 = scalar_lea.vmem %s496_s29, 16  ;;  %s3878_s20 = int_to_ptr.vmem [resolvable:$true] %s484_s20 }
  0x21   : > { %p3874_p12 = pnand %p4339_p9, %p3341_p11  ;;  %p3479_p0 = scmp.ne.s32.totalorder %s496_s29, %s3478_s28 }
  0x22   : > { %s3485_s22 = scalar_lea.vmem %s496_s29, 32  ;;  %p3486_p3 = scmp.lt.s32.totalorder %s496_s29, %s496_s29 }
  0x23   : > { %p3882_p13 = pneg %p3874_p12  ;;  %p3487_p4 = scmp.lt.s32.totalorder %s3485_s22, %s3478_s28 }
  0x25   : > { %p3481_p1 = pnand %p3479_p0, %p3882_p13  ;;  %p3488_p7 = por %p3487_p4, %p3486_p3 }
  0x27   : > { %p3482_p2 = pneg %p3481_p1 }
  0x29   : > { %p3489_p8 = pnand %p3488_p7, %p3482_p2 }
  0x2b   : > { %3492 = shalt.err (!%p3489_p8)
}
  0x2c   : > { %s4360_s0 = sld [smem:[#allocation27_spill]]  ;;  %s3504_s21 = scalar_lea.vmem %s524_s23, 16 }
  0x2d   : > { %p3505_p11 = scmp.ne.s32.totalorder %s524_s23, %s3504_s21  ;;  %s3511_s19 = scalar_lea.vmem %s524_s23, 32 }
  0x2e   : > { %p3512_p0 = scmp.lt.s32.totalorder %s524_s23, %s524_s23  ;;  %p3513_p1 = scmp.lt.s32.totalorder %s3511_s19, %s3504_s21 }
  0x2f   : > { %p3507_p9 = pnand %p3505_p11, %p3882_p13 }
  0x30   : > { %p3514_p5 = por %p3513_p1, %p3512_p0 }
  0x31   : > { %p3508_p6 = pneg %p3507_p9 }
  0x32   : > { %3347 = dma.hbm_to_vmem [thread:$0]  (!%p3874_p12), %s4360_s0, 16, %s496_s29, [#allocation6]  }
  0x33   : > { %p3515_p10 = pnand %p3514_p5, %p3508_p6 }
  0x35   : > { %3518 = shalt.err (!%p3515_p10)
}
  0x36   : > { %s4361_s6 = sld [smem:[#allocation29_spill]]  ;;  %s3530_s0 = scalar_lea.vmem %s3878_s20, 16 }
  0x37   : > { %p3531_p2 = scmp.ne.s32.totalorder %s3878_s20, %s3530_s0  ;;  %s3537_s19 = scalar_lea.vmem %s3878_s20, 32 }
  0x38   : > { %p3538_p5 = scmp.lt.s32.totalorder %s3878_s20, %s3878_s20  ;;  %p3539_p6 = scmp.lt.s32.totalorder %s3537_s19, %s3530_s0 }
  0x39   : > { %p3533_p9 = pnand %p3531_p2, %p3882_p13 }
  0x3a   : > { %p3540_p10 = por %p3539_p6, %p3538_p5 }
  0x3b   : > { %p3534_p3 = pneg %p3533_p9 }
  0x3c   : > { %3353 = dma.hbm_to_vmem [thread:$0]  (!%p3874_p12), %s4361_s6, 16, %s524_s23, [#allocation9]  }
  0x3d   : > { %p3541_p4 = pnand %p3540_p10, %p3534_p3 }
  0x3f   : > { %3544 = shalt.err (!%p3541_p4)
}
  0x40   : > { %s4362_s29 = sld [smem:[#allocation26_spill]]  ;;  %s3704_s23 = smov [#allocation7]  }
  0x41   : > { %s509_s25 = sshll.u32 %s3704_s23, 4  ;;  %s3705_s28 = smov [#allocation10]   ;;  %s510_s25 = int_to_ptr.vmem [resolvable:$true] %s509_s25 }
  0x42   : > { %s537_s22 = sshll.u32 %s3705_s28, 4  ;;  %s3556_s6 = scalar_lea.vmem %s510_s25, 16  ;;  %s538_s22 = int_to_ptr.vmem [resolvable:$true] %s537_s22 }
  0x43   : > { %p3557_p7 = scmp.ne.s32.totalorder %s510_s25, %s3556_s6  ;;  %s3563_s0 = scalar_lea.vmem %s510_s25, 32 }
  0x44   : > { %p3564_p0 = scmp.lt.s32.totalorder %s510_s25, %s510_s25  ;;  %p3565_p1 = scmp.lt.s32.totalorder %s3563_s0, %s3556_s6 }
  0x45   : > { %p3559_p8 = pnand %p3557_p7, %p3882_p13 }
  0x46   : > { %3344 = dma.hbm_to_vmem [thread:$0]  (!%p3874_p12), %s4362_s29, 16, %s3878_s20, [#allocation3]  }
  0x47   : > { %p3560_p11 = pneg %p3559_p8  ;;  %p3566_p2 = por %p3565_p1, %p3564_p0 }
  0x49   : > { %p3567_p9 = pnand %p3566_p2, %p3560_p11 }
  0x4b   : > { %3570 = shalt.err (!%p3567_p9)
}
  0x4c   : > { %3350 = dma.hbm_to_vmem [thread:$0]  (!%p3874_p12), %s4316_s4, 16, %s510_s25, [#allocation6]  }
  0x4d   : > { %s3582_s21 = scalar_lea.vmem %s538_s22, 16  ;;  %s3589_s26 = scalar_lea.vmem %s538_s22, 32 }
  0x4e   : > { %p3583_p3 = scmp.ne.s32.totalorder %s538_s22, %s3582_s21  ;;  %p3590_p10 = scmp.lt.s32.totalorder %s538_s22, %s538_s22 }
  0x4f   : > { %p3591_p4 = scmp.lt.s32.totalorder %s3589_s26, %s3582_s21 }
  0x50   : > { %p3585_p5 = pnand %p3583_p3, %p3882_p13 }
  0x51   : > { %p3592_p7 = por %p3591_p4, %p3590_p10 }
  0x52   : > { %p3586_p6 = pneg %p3585_p5 }
  0x54   : > { %p3593_p8 = pnand %p3592_p7, %p3586_p6 }
  0x56   : > { %3596 = shalt.err (!%p3593_p8)
}
  0x57   : > { %3356 = dma.hbm_to_vmem [thread:$0]  (!%p3874_p12), %s4320_s8, 16, %s538_s22, [#allocation9]  }
  0x58   : > { %s3706_s23 = smov [#allocation11]  }
  0x59   : > { %s565_s25 = sshll.u32 %s3706_s23, 4  ;;  %s566_s25 = int_to_ptr.vmem [resolvable:$true] %s565_s25 }
  0x5a   : > { %s3608_s28 = scalar_lea.vmem %s566_s25, 256  ;;  %p3616_p2 = scmp.lt.s32.totalorder %s566_s25, %s566_s25 }
  0x5b   : > { %p3609_p11 = scmp.ne.s32.totalorder %s566_s25, %s3608_s28  ;;  %p3617_p9 = scmp.lt.s32.totalorder %s3608_s28, %s3608_s28 }
  0x5d   : > { %p3611_p0 = pnand %p3609_p11, %p3882_p13  ;;  %p3618_p3 = por %p3617_p9, %p3616_p2 }
  0x5f   : > { %p3612_p1 = pneg %p3611_p0 }
  0x61   : > { %p3619_p5 = pnand %p3618_p3, %p3612_p1 }
  0x63   : > { %3622 = shalt.err (!%p3619_p5)
}
  0x64   : > { %s3707_s0 = smov 64   ;;  %s3708_s19 = smov 4  }
  0x65   : > { %3359 = dma.hbm_to_vmem [thread:$0]  (!%p3874_p12), %s4327_s15, 256, %s566_s25, [#allocation12], %s3707_s0, %s3707_s0, %s3708_s19  }
  0x66   : > { %p4363_p6 = scmp.ne.s32.totalorder %s4357_s27, 0 }
  0x67   : > { %p4364_p10 = scmp.eq.s32.totalorder (!%p4363_p6), %s3838_s1, 0 }
  0x68   : > { %597 = sbr.rel (%p4363_p6) target bundleno = 2833 (0xb11), region = 96 }
  0x6d   : > { %3666 = dma.done.wait (%p4364_p10), [#allocation3], 16   ;;  %p4365_p13 = pmov %p4364_p10 }
  0x6e   : > { %p4366_p4 = pmov %p4364_p10 }
  0x6f   : > { %3668 = vsyncadd (%p4365_p13), [#allocation3], 4294967280 }
  0x70   : > { %3670 = dma.done.wait (%p4366_p4), [#allocation6], 32   ;;  %p4367_p7 = pmov %p4366_p4 }
  0x71   : > { %p4368_p8 = pmov %p4366_p4 }
  0x72   : > { %3672 = vsyncadd (%p4367_p7), [#allocation6], 4294967264 }
  0x73   : > { %3674 = dma.done.wait (%p4368_p8), [#allocation9], 32   ;;  %p4369_p12 = pmov %p4366_p4 }
  0x74   : > { %p4370_p11 = pmov %p4366_p4 }
  0x75   : > { %3676 = vsyncadd (%p4369_p12), [#allocation9], 4294967264 }
  0x76   : > { %3678 = dma.done.wait (%p4370_p11), [#allocation12], 256   ;;  %p4371_p0 = pmov %p4366_p4 }
  0x77   : > { %p672_p1 = scmp.lt.s32.totalorder %s3838_s1, 1  ;;  %s4372_s26 = sld [smem:[#allocation25_spill]]  ;;  %vm680_vm0 = vcmask 261120   ;;  %v3424_v7 = vld [vmem:[%s4317_s5 + $0x8] sm:$0xff]   ;;  %v3709_v8 = vmov 0.0   ;;  %vm3710_vm1 = vmmov 0   ;;  %v854_v42 = vlaneseq }
  0x78   : > { %3680 = vsyncadd (%p4371_p0), [#allocation12], 4294967040  ;;  %3183 = vmatprep.subr.bf16.mxu0 %v3709_v8  ;;  %3187 = vmatprep.mubr.msk.bf16.mxu0 %vm3710_vm1, %v3709_v8  ;;  %v3425_v9 = vld [vmem:[%s4317_s5] sm:$0xff]   ;;  %v3426_v19 = vld [vmem:[%s4319_s7 + $0x8] sm:$0xff]   ;;  %s4373_s24 = sld [smem:[#allocation28_spill]]  ;;  %s3711_s29 = smov 104  }
  0x79   : > { %s673_s2 = scalar_select %p672_p1, %s3838_s1, 1  ;;  %3184 = vmatpush3.bf16.msra.mxu0 %v3424_v7  ;;  %3207 = vmatprep.subr.bf16.mxu1 %v3709_v8  ;;  %v3081_v14 = vld [vmem:[#allocation2] ss:$0 sm:$0xff]  ;;  %v3082_v16 = vld [vmem:[#allocation5] ss:$0 sm:$0xff]  ;;  %v855_v46 = vshrl.u32 %v854_v42, 7 }
  0x7a   : > { %3185 = vmatprep.subr.bf16.mxu0 %v3709_v8  ;;  %3209 = vmatprep.mubr.msk.bf16.mxu1 %vm3710_vm1, %v3709_v8  ;;  %v3427_v21 = vld [vmem:[%s4319_s7] sm:$0xff]   ;;  %s3712_s23 = smov 120   ;;  %s3713_s25 = smov 112   ;;  %v3714_v40 = vmov 1983009808   ;;  %vm2004_vm2 = vcmask 1043456  }
  0x7b   : > { %s3080_s27 = sshll.u32 %s673_s2, 3  ;;  %v3083_v24 = vld [vmem:[#allocation8] ss:$0 sm:$0xff]  ;;  %v3093_v34 = vld [vmem:[#allocation7] ss:$0 sm:$0xff]  ;;  %v852_v41 = vunpack.c.l.s4 %v3714_v40  ;;  %vm2000_vm3 = vcmask 64512  }
  0x7c   : > { %v3715_v43 = vmov 1934713408   ;;  %s669_s28 = sand.u32 1, %s3691_s30   ;;  %p4375_p9 = scmp.ne.s32.totalorder %s4354_s3, 0 }
  0x7d   : > { %s3957_s6 = scalar_lea.vmem %s4372_s26, %s3080_s27  ;;  %3186 = vmatpush3.bf16.msra.mxu0 %v3425_v9  ;;  %v884_v44 = vunpack.c.l.s4 %v3715_v43  ;;  %v853_v45 = vunpack.c.0.s8 %v852_v41  ;;  %s3079_s0 = sshll.u32 %s669_s28, 3 }
  0x7e   : > { %v677_v0 = vld [vmem:[%s3957_s6] sm:$0xff]  ;;  %3191 = vmatprep.subr.bf16.mxu0 %v3709_v8  ;;  %v3428_v22 = vld [vmem:[%s4373_s24 + $0x8] sm:$0xff]   ;;  %s671_s21 = scalar_lea.vmem [#allocation13], %s3079_s0  ;;  %s4374_s26 = sld [smem:[#allocation30_spill]] }
  0x7f   : > { %v681_v1 = vsel %vm680_vm0, %v677_v0, 0.0  ;;  %v3429_v23 = vld [vmem:[%s4373_s24] sm:$0xff]   ;;  %v885_v49 = vunpack.c.0.s8 %v884_v44  ;;  %v4010_v50 = vsub.s32 %v853_v45, %v855_v46  ;;  %s2944_s2 = sshll.u32 %s671_s21, 4  ;;  %s4272_s2 = int_to_ptr.vmem [resolvable:$true] %s2944_s2 }
  0x80   : > { %682 = vadd.xlane.f32.xlu0 %v681_v1 }
  0x81   : > { %v4012_v56 = vsub.s32 %v885_v49, %v855_v46 }
 0x109   : > { %v683_v2 = vpop.xlane.xlu0 %682 }
 0x10a   : > { %v685_v3 = vmul.f32 0.03125, %v683_v2 }
 0x10c   : > { %v686_v4 = vsub.f32 %v677_v0, %v685_v3 }
 0x10e   : > { %v687_v5 = vmul.f32 %v686_v4, %v686_v4 }
 0x110   : > { %v688_v6 = vsel %vm680_vm0, %v687_v5, 0.0 }
 0x111   : > { %689 = vadd.xlane.f32.xlu0 %v688_v6 }
 0x19a   : > { %v690_v10 = vpop.xlane.xlu0 %689 }
 0x19b   : > { %v691_v11 = vmul.f32 0.03125, %v690_v10 }
 0x19d   : > { %v692_v12 = vadd.f32 1e-05, %v691_v11 }
 0x19f   : > { %3442 = vrsqrt.f32 %v692_v12 }
 0x1ac   : > { %v3443_v13 = vpop.eup %3442 }
 0x1ad   : > { %v694_v15 = vmul.f32 %v3443_v13, %v686_v4 }
 0x1af   : > { %v701_v17 = vmul.f32 %v3081_v14, %v694_v15 }
 0x1b1   : > { %v708_v18 = vadd.f32 %v3082_v16, %v701_v17 }
 0x1b3   : > { %v709_v20 = vpack.c.bf16 %v708_v18, %v708_v18 }
 0x1b5   : > { %3188 = vmatmul.mubr.msk.bf16.vlgmr.msra.gmra.mxu0 %vm680_vm0, %v709_v20 }
 0x1b6   : > { %3192 = vmatpush3.bf16.msra.mxu0 %v3426_v19  ;;  %3195 = vmatprep.mubr.msk.bf16.mxu0 %vm3710_vm1, %v3709_v8 }
 0x1b7   : > { %3193 = vmatprep.subr.bf16.mxu0 %v3709_v8 }
 0x1ba   : > { %3194 = vmatpush3.bf16.msra.mxu0 %v3427_v21 }
 0x1bb   : > { %3199 = vmatprep.subr.bf16.mxu0 %v3709_v8 }
 0x1bd   : > { %3196 = vmatmul.mubr.msk.bf16.vlgmr.msra.gmra.mxu0 %vm680_vm0, %v709_v20 }
 0x1be   : > { %3200 = vmatpush3.bf16.msra.mxu0 %v3428_v22  ;;  %3203 = vmatprep.mubr.msk.bf16.mxu0 %vm3710_vm1, %v3709_v8 }
 0x1bf   : > { %3201 = vmatprep.subr.bf16.mxu0 %v3709_v8 }
 0x1c2   : > { %3202 = vmatpush3.bf16.msra.mxu0 %v3429_v23 }
 0x1c3   : > { %3213 = vmatprep.subr.bf16.mxu0 %v3709_v8 }
 0x1c5   : > { %3204 = vmatmul.mubr.msk.bf16.vlgmr.msra.gmra.mxu0 %vm680_vm0, %v709_v20 }
 0x1c6   : > { %3215 = vmatprep.mubr.msk.bf16.mxu0 %vm3710_vm1, %v3709_v8 }
 0x275   : > { %v770_v25 = vpop.f32.mrf.mxu0 }
 0x276   : > { %v771_v26 = vadd.f32 %v3083_v24, %v770_v25 }
 0x277   : > { %v3189_v27 = vpop.f32.mrf.mxu0 }
 0x278   : > { %846 = vrot.lane.b32.xlu0 %v771_v26, %s3711_s29  ;;  %840 = vrot.lane.b32.xlu1 %v771_v26, %s3712_s23 }
 0x279   : > { %v773_v28 = vpop.f32.mrf.mxu0 }
 0x27b   : > { %v3190_v29 = vpop.f32.mrf.mxu0 }
 0x27c   : > { %843 = vrot.lane.b32.xlu1 %v771_v26, %s3713_s25 }
 0x27d   : > { %v4004_v30 = vpop.f32.mrf.mxu0 }
 0x27f   : > { %v3197_v31 = vpop.f32.mrf.mxu0 }
 0x281   : > { %v836_v32 = vpop.f32.mrf.mxu0 }
 0x283   : > { %v3198_v33 = vpop.f32.mrf.mxu0 }
 0x285   : > { %v1844_v35 = vpop.f32.mrf.mxu0 }
 0x286   : > { %v4006_v36 = vadd.f32 %v3093_v34, %v1844_v35 }
 0x287   : > { %v3205_v37 = vpop.f32.mrf.mxu0 }
 0x288   : > { %1851 = vrot.lane.b32.xlu1 %v4006_v36, %s3712_s23 }
 0x289   : > { %v1847_v38 = vpop.f32.mrf.mxu0 }
 0x28b   : > { %v3206_v39 = vpop.f32.mrf.mxu0 }
 0x2ea   : > { %v847_v47 = vpop.permute.xlu0 %846  ;;  %v841_v48 = vpop.permute.xlu1 %840 }
 0x2eb   : > { %v865_v51 = vcombine.low %v841_v48, %v847_v47  ;;  %v866_v52 = vcombine.high %v841_v48, %v847_v47 }
 0x2ed   : > { %v873_v57 = vrot.slane %v865_v51, %v4010_v50  ;;  %v880_v58 = vrot.slane %v866_v52, %v4010_v50 }
 0x2ee   : > { %v844_v53 = vpop.permute.xlu1 %843 }
 0x2ef   : > { %v849_v54 = vcombine.low %v771_v26, %v844_v53  ;;  %v850_v55 = vcombine.high %v771_v26, %v844_v53 }
 0x2f1   : > { %v857_v59 = vrot.slane %v849_v54, %v4010_v50  ;;  %v864_v60 = vrot.slane %v850_v55, %v4010_v50 }
 0x2f3   : > { %v881_v61 = vcombine.low %v857_v59, %v873_v57  ;;  %v897_v62 = vcombine.low %v864_v60, %v880_v58  ;;  %v882_v0 = vcombine.high %v857_v59, %v873_v57  ;;  %v898_v3 = vcombine.high %v864_v60, %v880_v58 }
 0x2f5   : > { %v889_v63 = vrot.slane %v881_v61, %v4012_v56  ;;  %v905_v2 = vrot.slane %v897_v62, %v4012_v56  ;;  %v896_v4 = vrot.slane %v882_v0, %v4012_v56  ;;  %v912_v6 = vrot.slane %v898_v3, %v4012_v56 }
 0x2f7   : > { %917 = vxpose.xlu1.b32.start.end [1/1] (short) (narrow) %v889_v63, 8  ;;  %v913_v1 = vcombine.high %v889_v63, %v3709_v8  ;;  %v915_v5 = vcombine.high %v905_v2, %v3709_v8  ;;  %v916_v7 = vcombine.high %v912_v6, %v3709_v8  ;;  %v914_v9 = vcombine.high %v896_v4, %v3709_v8  ;;  %v3087_v63 = vld [vmem:[#allocation10] ss:$0 sm:$0xff] }
 0x2f8   : > { %v4049_v0 = vadd.f32 %v3087_v63, %v4004_v30 }
 0x2f9   : > { %949 = vxpose.xlu0.b32.start.end [1/1] (short) (narrow) %v913_v1, 8 }
 0x2fa   : > { %v4030_v10 = vpop.permute.xlu1 %1851 }
 0x2fb   : > { %981 = vxpose.xlu1.b32.start.end [1/1] (short) (narrow) %v896_v4, 8 }
 0x2fd   : > { %1077 = vxpose.xlu0.b32.start.end [1/1] (short) (narrow) %v915_v5, 8 }
 0x2ff   : > { %1045 = vxpose.xlu1.b32.start.end [1/1] (short) (narrow) %v905_v2, 8 }
 0x301   : > { %1141 = vxpose.xlu0.b32.start.end [1/1] (short) (narrow) %v916_v7, 8 }
 0x303   : > { %1109 = vxpose.xlu1.b32.start.end [1/1] (short) (narrow) %v912_v6, 8 }
 0x307   : > { %1013 = vxpose.xlu1.b32.start.end [1/1] (short) (narrow) %v914_v9, 8 }
 0x325   : > { %1857 = vrot.lane.b32.xlu1 %v4006_v36, %s3711_s29 }
 0x32a   : > { %1854 = vrot.lane.b32.xlu0 %v4006_v36, %s3713_s25 }
 0x373   : > { %v933_v11 = vpop.trf.xlu1 }
 0x375   : > { %v965_v12 = vpop.trf.xlu0 }
 0x377   : > { %v997_v13 = vpop.trf.xlu1 }
 0x378   : > { %v1173_v20 = vcombine.low %v933_v11, %v997_v13  ;;  %v1174_v26 = vcombine.high %v933_v11, %v997_v13 }
 0x379   : > { %v1093_v14 = vpop.trf.xlu0 }
 0x37a   : > { %v1181_v28 = vrot.slane %v1173_v20, %v4010_v50  ;;  %v1188_v37 = vrot.slane %v1174_v26, %v4010_v50 }
 0x37b   : > { %v1061_v15 = vpop.trf.xlu1 }
 0x37d   : > { %v1157_v16 = vpop.trf.xlu0 }
 0x37e   : > { %v1221_v17 = vcombine.low %v1093_v14, %v1157_v16  ;;  %v1222_v27 = vcombine.high %v1093_v14, %v1157_v16 }
 0x37f   : > { %v1125_v18 = vpop.trf.xlu1 }
 0x380   : > { %v1205_v19 = vcombine.low %v1061_v15, %v1125_v18  ;;  %v1229_v21 = vrot.slane %v1221_v17, %v4010_v50  ;;  %v1206_v29 = vcombine.high %v1061_v15, %v1125_v18  ;;  %v1236_v38 = vrot.slane %v1222_v27, %v4010_v50 }
 0x382   : > { %v1213_v22 = vrot.slane %v1205_v19, %v4010_v50  ;;  %v1220_v39 = vrot.slane %v1206_v29, %v4010_v50 }
 0x383   : > { %v1029_v23 = vpop.trf.xlu1 }
 0x384   : > { %v1189_v24 = vcombine.low %v965_v12, %v1029_v23  ;;  %v1190_v25 = vcombine.high %v965_v12, %v1029_v23  ;;  %v1269_v31 = vcombine.low %v1213_v22, %v1229_v21  ;;  %v1270_v42 = vcombine.high %v1213_v22, %v1229_v21 }
 0x385   : > { %v1285_v48 = vcombine.low %v1220_v39, %v1236_v38  ;;  %v1286_v55 = vcombine.high %v1220_v39, %v1236_v38 }
 0x386   : > { %v1197_v32 = vrot.slane %v1189_v24, %v4010_v50  ;;  %v1204_v33 = vrot.slane %v1190_v25, %v4010_v50  ;;  %v1277_v41 = vrot.slane %v1269_v31, %v4012_v56  ;;  %v1284_v47 = vrot.slane %v1270_v42, %v4012_v56 }
 0x387   : > { %v1293_v54 = vrot.slane %v1285_v48, %v4012_v56  ;;  %v1300_v60 = vrot.slane %v1286_v55, %v4012_v56 }
 0x388   : > { %v1237_v34 = vcombine.low %v1181_v28, %v1197_v32  ;;  %v1238_v35 = vcombine.high %v1181_v28, %v1197_v32  ;;  %v1253_v46 = vcombine.low %v1188_v37, %v1204_v33  ;;  %v1254_v53 = vcombine.high %v1188_v37, %v1204_v33 }
 0x38a   : > { %v1245_v40 = vrot.slane %v1237_v34, %v4012_v56  ;;  %v1252_v45 = vrot.slane %v1238_v35, %v4012_v56  ;;  %v1261_v52 = vrot.slane %v1253_v46, %v4012_v56  ;;  %v1268_v59 = vrot.slane %v1254_v53, %v4012_v56 }
 0x38c   : > { %v1302_v43 = vcombine.high %v1245_v40, %v1277_v41  ;;  %v1301_v44 = vcombine.low %v1245_v40, %v1277_v41  ;;  %v1303_v49 = vcombine.low %v1252_v45, %v1284_v47  ;;  %v1304_v51 = vcombine.high %v1252_v45, %v1284_v47 }
 0x38d   : > { %v1305_v57 = vcombine.low %v1261_v52, %v1293_v54  ;;  %v1306_v58 = vcombine.high %v1261_v52, %v1293_v54  ;;  %v1307_v61 = vcombine.low %v1268_v59, %v1300_v60  ;;  %v1308_v62 = vcombine.high %v1268_v59, %v1300_v60 }
 0x38e   : > { %1341 = vxpose.xlu0.b32.start.end [1/1] (short) (narrow) %v1302_v43, 8  ;;  %1309 = vxpose.xlu1.b32.start.end [1/1] (short) (narrow) %v1301_v44, 8 }
 0x392   : > { %1373 = vxpose.xlu0.b32.start.end [1/1] (short) (narrow) %v1303_v49, 8  ;;  %1405 = vxpose.xlu1.b32.start.end [1/1] (short) (narrow) %v1304_v51, 8 }
 0x396   : > { %1437 = vxpose.xlu0.b32.start.end [1/1] (short) (narrow) %v1305_v57, 8  ;;  %1469 = vxpose.xlu1.b32.start.end [1/1] (short) (narrow) %v1306_v58, 8 }
 0x397   : > { %v1858_v2 = vpop.permute.xlu1 %1857 }
 0x398   : > { %v1876_v5 = vcombine.low %v4030_v10, %v1858_v2  ;;  %v1877_v6 = vcombine.high %v4030_v10, %v1858_v2 }
 0x39a   : > { %1501 = vxpose.xlu0.b32.start.end [1/1] (short) (narrow) %v1307_v61, 8  ;;  %1533 = vxpose.xlu1.b32.start.end [1/1] (short) (narrow) %v1308_v62, 8  ;;  %v1884_v30 = vrot.slane %v1876_v5, %v4010_v50  ;;  %v1891_v11 = vrot.slane %v1877_v6, %v4010_v50 }
 0x39c   : > { %v1855_v1 = vpop.permute.xlu0 %1854 }
 0x39d   : > { %v1860_v3 = vcombine.low %v4006_v36, %v1855_v1  ;;  %v1861_v4 = vcombine.high %v4006_v36, %v1855_v1 }
 0x39f   : > { %v1868_v7 = vrot.slane %v1860_v3, %v4010_v50  ;;  %v1875_v9 = vrot.slane %v1861_v4, %v4010_v50 }
 0x3a1   : > { %v1892_v12 = vcombine.low %v1868_v7, %v1884_v30  ;;  %v1893_v13 = vcombine.high %v1868_v7, %v1884_v30  ;;  %v1908_v14 = vcombine.low %v1875_v9, %v1891_v11  ;;  %v1909_v15 = vcombine.high %v1875_v9, %v1891_v11 }
 0x3a3   : > { %v1900_v36 = vrot.slane %v1892_v12, %v4012_v56  ;;  %v1907_v18 = vrot.slane %v1893_v13, %v4012_v56  ;;  %v1916_v10 = vrot.slane %v1908_v14, %v4012_v56  ;;  %v1923_v19 = vrot.slane %v1909_v15, %v4012_v56 }
 0x3a5   : > { %v1928_v22 = vcombine.low %v1900_v36, %v1907_v18  ;;  %v3097_v23 = vcombine.high %v1900_v36, %v1907_v18  ;;  %v1944_v24 = vcombine.low %v1916_v10, %v1923_v19  ;;  %v3098_v25 = vcombine.high %v1916_v10, %v1923_v19 }
 0x3a7   : > { %v1935_v31 = vrot.slane %v1928_v22, %v4010_v50  ;;  %v1943_v32 = vrot.slane %v3097_v23, %v4010_v50  ;;  %v1951_v33 = vrot.slane %v1944_v24, %v4010_v50  ;;  %v1959_v34 = vrot.slane %v3098_v25, %v4010_v50 }
 0x3a9   : > { %v1960_v42 = vcombine.low %v1935_v31, %v1943_v32  ;;  %v1976_v43 = vcombine.low %v1951_v33, %v1959_v34  ;;  %v1961_v62 = vcombine.high %v1935_v31, %v1943_v32  ;;  %v1977_v63 = vcombine.high %v1951_v33, %v1959_v34 }
 0x3ab   : > { %v1968_v51 = vrot.slane %v1960_v42, %v4012_v56  ;;  %v1984_v52 = vrot.slane %v1976_v43, %v4012_v56  ;;  %v1975_v30 = vrot.slane %v1961_v62, %v4012_v56  ;;  %v1991_v13 = vrot.slane %v1977_v63, %v4012_v56 }
 0x3ad   : > { %v1992_v3 = vcombine.low %v1968_v51, %v1984_v52  ;;  %v1993_v4 = vcombine.high %v1968_v51, %v1984_v52 }
 0x3af   : > { %v1996_v11 = vpack.c.bf16 %v1992_v3, %v1992_v3  ;;  %v1997_v12 = vpack.c.bf16 %v1993_v4, %v1993_v4 }
 0x3b8   : > { %1638 = vrot.lane.b32.xlu1 %v4049_v0, %s3712_s23  ;;  %s3623_s23 = scalar_lea.vmem %s4272_s2, 128 }
 0x3b9   : > { %p3624_p2 = scmp.ne.s32.totalorder %s4272_s2, %s3623_s23 }
 0x3bb   : > { %p3625_p3 = pnand %p3624_p2, %p4375_p9 }
 0x3bd   : > { %p3626_p5 = pneg %p3625_p3 }
 0x40a   : > { %v1357_v16 = vpop.trf.xlu0  ;;  %v1325_v17 = vpop.trf.xlu1 }
 0x40e   : > { %v1389_v20 = vpop.trf.xlu0  ;;  %v1421_v21 = vpop.trf.xlu1 }
 0x40f   : > { %v1565_v26 = vcombine.low %v1325_v17, %v1389_v20  ;;  %v1573_v27 = vcombine.low %v1357_v16, %v1421_v21  ;;  %v1994_v16 = vcombine.low %v1975_v30, %v1991_v13  ;;  %v1995_v17 = vcombine.high %v1975_v30, %v1991_v13 }
 0x411   : > { %v1572_v35 = vrot.slane %v1565_v26, %v4010_v50  ;;  %v1580_v37 = vrot.slane %v1573_v27, %v4010_v50  ;;  %v1998_v36 = vpack.c.bf16 %v1994_v16, %v1994_v16  ;;  %v1999_v18 = vpack.c.bf16 %v1995_v17, %v1995_v17 }
 0x412   : > { %v1453_v28 = vpop.trf.xlu0  ;;  %v1485_v29 = vpop.trf.xlu1 }
 0x413   : > { %v1597_v44 = vcombine.low %v1572_v35, %v1580_v37  ;;  %v1598_v45 = vcombine.high %v1572_v35, %v1580_v37 }
 0x415   : > { %v1612_v53 = vrot.slane %v1598_v45, %v4012_v56  ;;  %v1605_v55 = vrot.slane %v1597_v44, %v4012_v56 }
 0x416   : > { %v1517_v38 = vpop.trf.xlu0  ;;  %v1549_v39 = vpop.trf.xlu1 }
 0x417   : > { %v1581_v40 = vcombine.low %v1453_v28, %v1517_v38  ;;  %v1589_v41 = vcombine.low %v1485_v29, %v1549_v39 }
 0x419   : > { %v1588_v46 = vrot.slane %v1581_v40, %v4010_v50  ;;  %v1596_v47 = vrot.slane %v1589_v41, %v4010_v50 }
 0x41b   : > { %v1613_v48 = vcombine.low %v1588_v46, %v1596_v47  ;;  %v1614_v49 = vcombine.high %v1588_v46, %v1596_v47 }
 0x41d   : > { %v1628_v54 = vrot.slane %v1614_v49, %v4012_v56  ;;  %v1621_v57 = vrot.slane %v1613_v48, %v4012_v56 }
 0x41f   : > { %v1629_v58 = vcombine.low %v1605_v55, %v1621_v57  ;;  %v1630_v59 = vcombine.high %v1605_v55, %v1621_v57  ;;  %v1631_v60 = vcombine.low %v1612_v53, %v1628_v54  ;;  %v1632_v61 = vcombine.high %v1612_v53, %v1628_v54 }
 0x421   : > { %v1633_v1 = vpack.c.bf16 %v1629_v58, %v1629_v58  ;;  %v1634_v2 = vpack.c.bf16 %v1630_v59, %v1630_v59  ;;  %v1635_v7 = vpack.c.bf16 %v1631_v60, %v1631_v60  ;;  %v1636_v9 = vpack.c.bf16 %v1632_v61, %v1632_v61 }
 0x423   : > { %v2006_v5 = vsel %vm2004_vm2, %v1633_v1, 0  ;;  %v2052_v6 = vsel %vm2004_vm2, %v1634_v2, 0  ;;  %v2098_v14 = vsel %vm2004_vm2, %v1635_v7, 0  ;;  %v2144_v15 = vsel %vm2004_vm2, %v1636_v9, 0 }
 0x424   : > { %3208 = vmatpush3.bf16.msra.mxu1 %v2006_v5  ;;  %3214 = vmatpush3.bf16.msra.mxu0 %v2052_v6 }
 0x425   : > { %3219 = vmatprep.subr.bf16.mxu1 %v3709_v8  ;;  %3225 = vmatprep.subr.bf16.mxu0 %v3709_v8 }
 0x427   : > { %3210 = vmatmul.mubr.msk.bf16.vlgmr.msra.gmra.mxu1 %vm2000_vm3, %v1996_v11  ;;  %3216 = vmatmul.mubr.msk.bf16.vlgmr.msra.gmra.mxu0 %vm2000_vm3, %v1997_v12 }
 0x428   : > { %3220 = vmatpush3.bf16.msra.mxu1 %v2098_v14  ;;  %3226 = vmatpush3.bf16.msra.mxu0 %v2144_v15 }
 0x429   : > { %3221 = vmatprep.mubr.msk.bf16.mxu1 %vm3710_vm1, %v3709_v8  ;;  %3227 = vmatprep.mubr.msk.bf16.mxu0 %vm3710_vm1, %v3709_v8 }
 0x42a   : > { %3231 = vmatprep.subr.bf16.mxu1 %v3709_v8  ;;  %3237 = vmatprep.subr.bf16.mxu0 %v3709_v8  ;;  %v1639_v40 = vpop.permute.xlu1 %1638 }
 0x42f   : > { %3222 = vmatmul.mubr.msk.bf16.vlgmr.msra.gmra.mxu1 %vm2000_vm3, %v1998_v36  ;;  %3228 = vmatmul.mubr.msk.bf16.vlgmr.msra.gmra.mxu0 %vm2000_vm3, %v1999_v18 }
 0x430   : > { %3233 = vmatprep.mubr.msk.bf16.mxu1 %vm3710_vm1, %v3709_v8  ;;  %3239 = vmatprep.mubr.msk.bf16.mxu0 %vm3710_vm1, %v3709_v8 }
 0x4e7   : > { %v2042_v10 = vpop.f32.mrf.mxu1  ;;  %v2088_v19 = vpop.f32.mrf.mxu0 }
 0x4e8   : > { %v2186_v20 = vsel %vm2000_vm3, %v2042_v10, -inf  ;;  %v2189_v21 = vsel %vm2000_vm3, %v2088_v19, -inf }
 0x4e9   : > { %2187 = vmax.xlane.f32.xlu0 %v2186_v20  ;;  %v3211_v22 = vpop.f32.mrf.mxu1  ;;  %2190 = vmax.xlane.f32.xlu1 %v2189_v21  ;;  %v3217_v23 = vpop.f32.mrf.mxu0 }
 0x4eb   : > { %v2045_v24 = vpop.f32.mrf.mxu1  ;;  %v2091_v25 = vpop.f32.mrf.mxu0 }
 0x4ed   : > { %v3212_v26 = vpop.f32.mrf.mxu1  ;;  %v3218_v27 = vpop.f32.mrf.mxu0 }
 0x4ef   : > { %v4103_v28 = vpop.f32.mrf.mxu1  ;;  %v4105_v29 = vpop.f32.mrf.mxu0 }
 0x4f0   : > { %v2192_v38 = vsel %vm2000_vm3, %v4103_v28, -inf  ;;  %v2195_v39 = vsel %vm2000_vm3, %v4105_v29, -inf }
 0x4f1   : > { %v3223_v31 = vpop.f32.mrf.mxu1  ;;  %v3229_v32 = vpop.f32.mrf.mxu0 }
 0x4f3   : > { %v2137_v33 = vpop.f32.mrf.mxu1  ;;  %v2183_v34 = vpop.f32.mrf.mxu0 }
 0x4f5   : > { %v3224_v35 = vpop.f32.mrf.mxu1  ;;  %v3230_v37 = vpop.f32.mrf.mxu0 }
 0x4fa   : > { %1644 = vrot.lane.b32.xlu1 %v4049_v0, %s3711_s29 }
 0x4ff   : > { %1641 = vrot.lane.b32.xlu0 %v4049_v0, %s3713_s25  ;;  %s3716_s25 = smov [#allocation13]  }
 0x500   : > { %s3627_s0 = sshll.u32 %s3716_s25, 4  ;;  %s3628_s0 = int_to_ptr.vmem [resolvable:$false] %s3627_s0 }
 0x501   : > { %s3629_s19 = scalar_lea.vmem %s3628_s0, 256  ;;  %p3630_p6 = scmp.lt.s32.totalorder %s4272_s2, %s3628_s0 }
 0x502   : > { %p3631_p10 = scmp.lt.s32.totalorder %s3629_s19, %s3623_s23 }
 0x504   : > { %p3632_p13 = por %p3631_p10, %p3630_p6 }
 0x506   : > { %p3633_p4 = pnand %p3632_p13, %p3626_p5 }
 0x51e   : > { %2193 = vmax.xlane.f32.xlu1 %v2192_v38  ;;  %2196 = vmax.xlane.f32.xlu0 %v2195_v39 }
 0x572   : > { %v2188_v41 = vpop.xlane.xlu0 %2187  ;;  %v2191_v42 = vpop.xlane.xlu1 %2190 }
 0x573   : > { %v2198_v43 = vsub.f32 %v2042_v10, %v2188_v41  ;;  %v2199_v44 = vsub.f32 %v2088_v19, %v2191_v42 }
 0x575   : > { %v2202_v45 = vmul.f32 1.442695, %v2198_v43  ;;  %v2204_v46 = vmul.f32 1.442695, %v2199_v44 }
 0x576   : > { %v1642_v47 = vpop.permute.xlu0 %1641  ;;  %v1645_v48 = vpop.permute.xlu1 %1644 }
 0x577   : > { %3444 = vpow2.f32 %v2202_v45  ;;  %v1647_v49 = vcombine.low %v4049_v0, %v1642_v47  ;;  %v1648_v51 = vcombine.high %v4049_v0, %v1642_v47  ;;  %v1663_v52 = vcombine.low %v1639_v40, %v1645_v48 }
 0x578   : > { %3446 = vpow2.f32 %v2204_v46  ;;  %v1664_v53 = vcombine.high %v1639_v40, %v1645_v48 }
 0x579   : > { %v1655_v54 = vrot.slane %v1647_v49, %v4010_v50  ;;  %v1662_v55 = vrot.slane %v1648_v51, %v4010_v50  ;;  %v1671_v57 = vrot.slane %v1663_v52, %v4010_v50 }
 0x57a   : > { %v1678_v58 = vrot.slane %v1664_v53, %v4010_v50 }
 0x57b   : > { %v1679_v59 = vcombine.low %v1655_v54, %v1671_v57  ;;  %v1680_v60 = vcombine.high %v1655_v54, %v1671_v57 }
 0x57c   : > { %v1695_v61 = vcombine.low %v1662_v55, %v1678_v58  ;;  %v1696_v62 = vcombine.high %v1662_v55, %v1678_v58 }
 0x57d   : > { %v1687_v63 = vrot.slane %v1679_v59, %v4012_v56  ;;  %v1694_v1 = vrot.slane %v1680_v60, %v4012_v56  ;;  %v2424_v60 = vld [vmem:[%s4321_s9 + $0x8] sm:$0xf] }
 0x57e   : > { %v1703_v0 = vrot.slane %v1695_v61, %v4012_v56  ;;  %v1710_v2 = vrot.slane %v1696_v62, %v4012_v56  ;;  %v2425_v61 = vld [vmem:[%s4321_s9 + $0xc] sm:$0xf] }
 0x57f   : > { %v1715_v3 = vcombine.low %v1687_v63, %v1694_v1  ;;  %v3091_v4 = vcombine.high %v1687_v63, %v1694_v1 }
 0x580   : > { %v1731_v5 = vcombine.low %v1703_v0, %v1710_v2  ;;  %v3092_v6 = vcombine.high %v1703_v0, %v1710_v2 }
 0x581   : > { %v1722_v7 = vrot.slane %v1715_v3, %v4010_v50  ;;  %v1730_v9 = vrot.slane %v3091_v4, %v4010_v50  ;;  %v2522_v4 = vsel %vm2004_vm2, %v2424_v60, 0 }
 0x582   : > { %v1738_v30 = vrot.slane %v1731_v5, %v4010_v50  ;;  %v1746_v11 = vrot.slane %v3092_v6, %v4010_v50  ;;  %v2568_v5 = vsel %vm2004_vm2, %v2425_v61, 0 }
 0x583   : > { %v1747_v12 = vcombine.low %v1722_v7, %v1730_v9  ;;  %v1748_v13 = vcombine.high %v1722_v7, %v1730_v9 }
 0x584   : > { %v3445_v14 = vpop.eup %3444  ;;  %v1763_v15 = vcombine.low %v1738_v30, %v1746_v11  ;;  %v1764_v16 = vcombine.high %v1738_v30, %v1746_v11 }
 0x585   : > { %v3447_v17 = vpop.eup %3446  ;;  %v2210_v36 = vsel %vm2000_vm3, %v3445_v14, 0.0  ;;  %v1755_v18 = vrot.slane %v1747_v12, %v4012_v56  ;;  %v1762_v10 = vrot.slane %v1748_v13, %v4012_v56  ;;  %v2222_v34 = vpack.c.bf16 %v3445_v14, %v3445_v14 }
 0x586   : > { %2211 = vadd.xlane.f32.xlu1 %v2210_v36  ;;  %v2213_v19 = vsel %vm2000_vm3, %v3447_v17, 0.0  ;;  %v1771_v20 = vrot.slane %v1763_v15, %v4012_v56  ;;  %v1778_v21 = vrot.slane %v1764_v16, %v4012_v56  ;;  %v2223_v35 = vpack.c.bf16 %v3447_v17, %v3447_v17 }
 0x587   : > { %2214 = vadd.xlane.f32.xlu0 %v2213_v19 }
 0x588   : > { %v1779_v50 = vcombine.low %v1755_v18, %v1771_v20  ;;  %v1780_v22 = vcombine.high %v1755_v18, %v1771_v20  ;;  %v1781_v23 = vcombine.low %v1762_v10, %v1778_v21  ;;  %v1782_v24 = vcombine.high %v1762_v10, %v1778_v21 }
 0x58a   : > { %v1783_v25 = vpack.c.bf16 %v1779_v50, %v1779_v50  ;;  %v1784_v26 = vpack.c.bf16 %v1780_v22, %v1780_v22  ;;  %v1785_v32 = vpack.c.bf16 %v1781_v23, %v1781_v23  ;;  %v1786_v33 = vpack.c.bf16 %v1782_v24, %v1782_v24  ;;  %v3430_v24 = vld [vmem:[%s4323_s11 + $0x8] sm:$0xff]  }
 0x58c   : > { %v2230_v27 = vsel %vm2004_vm2, %v1783_v25, 0  ;;  %v2276_v31 = vsel %vm2004_vm2, %v1784_v26, 0  ;;  %v2322_v56 = vsel %vm2004_vm2, %v1785_v32, 0  ;;  %v2368_v37 = vsel %vm2004_vm2, %v1786_v33, 0  ;;  %v3431_v25 = vld [vmem:[%s4323_s11] sm:$0xff]  }
 0x58d   : > { %3232 = vmatpush3.bf16.msra.mxu1 %v2230_v27  ;;  %3238 = vmatpush3.bf16.msra.mxu0 %v2276_v31 }
 0x58e   : > { %3243 = vmatprep.subr.bf16.mxu1 %v3709_v8  ;;  %3249 = vmatprep.subr.bf16.mxu0 %v3709_v8 }
 0x590   : > { %3234 = vmatmul.mubr.msk.bf16.vlgmr.msra.gmra.mxu1 %vm2000_vm3, %v2222_v34  ;;  %3240 = vmatmul.mubr.msk.bf16.vlgmr.msra.gmra.mxu0 %vm2000_vm3, %v2223_v35 }
 0x591   : > { %3244 = vmatpush3.bf16.msra.mxu1 %v2322_v56  ;;  %3250 = vmatpush3.bf16.msra.mxu0 %v2368_v37 }
 0x592   : > { %3245 = vmatprep.mubr.msk.bf16.mxu1 %vm3710_vm1, %v3709_v8  ;;  %3251 = vmatprep.mubr.msk.bf16.mxu0 %vm3710_vm1, %v3709_v8 }
 0x593   : > { %3255 = vmatprep.subr.bf16.mxu1 %v3709_v8  ;;  %3261 = vmatprep.subr.bf16.mxu0 %v3709_v8 }
 0x5a7   : > { %v2194_v38 = vpop.xlane.xlu1 %2193  ;;  %v2197_v39 = vpop.xlane.xlu0 %2196 }
 0x5a8   : > { %v2200_v40 = vsub.f32 %v4103_v28, %v2194_v38  ;;  %v2201_v41 = vsub.f32 %v4105_v29, %v2197_v39  ;;  %v2422_v28 = vld [vmem:[%s4321_s9] sm:$0xf]  ;;  %v2423_v29 = vld [vmem:[%s4321_s9 + $0x4] sm:$0xf] }
 0x5a9   : > { %v2430_v51 = vsel %vm2004_vm2, %v2422_v28, 0  ;;  %v2476_v52 = vsel %vm2004_vm2, %v2423_v29, 0 }
 0x5aa   : > { %v2206_v42 = vmul.f32 1.442695, %v2200_v40  ;;  %v2208_v43 = vmul.f32 1.442695, %v2201_v41 }
 0x5ac   : > { %3448 = vpow2.f32 %v2206_v42 }
 0x5ad   : > { %3450 = vpow2.f32 %v2208_v43 }
 0x5b9   : > { %v3449_v44 = vpop.eup %3448 }
 0x5ba   : > { %v3451_v45 = vpop.eup %3450  ;;  %v2216_v46 = vsel %vm2000_vm3, %v3449_v44, 0.0  ;;  %v2224_v47 = vpack.c.bf16 %v3449_v44, %v3449_v44 }
 0x5bb   : > { %2217 = vadd.xlane.f32.xlu1 %v2216_v46  ;;  %v2219_v48 = vsel %vm2000_vm3, %v3451_v45, 0.0  ;;  %v2225_v49 = vpack.c.bf16 %v3451_v45, %v3451_v45  ;;  %v3111_v46 = vld [vmem:[%s4322_s10] ss:$0 sm:$0xff] }
 0x5bc   : > { %2220 = vadd.xlane.f32.xlu0 %v2219_v48  ;;  %3246 = vmatmul.mubr.msk.bf16.vlgmr.msra.gmra.mxu1 %vm2000_vm3, %v2224_v47 }
 0x5bd   : > { %3252 = vmatmul.mubr.msk.bf16.vlgmr.msra.gmra.mxu0 %vm2000_vm3, %v2225_v49  ;;  %3257 = vmatprep.mubr.msk.bf16.mxu1 %vm3710_vm1, %v3709_v8 }
 0x5be   : > { %3263 = vmatprep.mubr.msk.bf16.mxu0 %vm3710_vm1, %v3709_v8  ;;  %3256 = vmatpush3.bf16.msra.mxu1 %v2430_v51 }
 0x5bf   : > { %3262 = vmatpush3.bf16.msra.mxu0 %v2476_v52  ;;  %3267 = vmatprep.subr.bf16.mxu1 %v3709_v8 }
 0x5c0   : > { %3273 = vmatprep.subr.bf16.mxu0 %v3709_v8 }
 0x60f   : > { %v2212_v53 = vpop.xlane.xlu1 %2211 }
 0x610   : > { %v2215_v54 = vpop.xlane.xlu0 %2214  ;;  %3452 = vrcp.f32 %v2212_v53 }
 0x611   : > { %3454 = vrcp.f32 %v2215_v54  ;;  %v3112_v54 = vld [vmem:[%s4324_s12] ss:$0 sm:$0xff] }
 0x61d   : > { %v3453_v55 = vpop.eup %3452 }
 0x61e   : > { %v3455_v57 = vpop.eup %3454 }
 0x644   : > { %v2218_v11 = vpop.xlane.xlu1 %2217 }
 0x645   : > { %v2221_v12 = vpop.xlane.xlu0 %2220  ;;  %3456 = vrcp.f32 %v2218_v11 }
 0x646   : > { %3458 = vrcp.f32 %v2221_v12  ;;  %v3116_v12 = vld [vmem:[%s4325_s13] ss:$0 sm:$0xff] }
 0x650   : > { %v2266_v58 = vpop.f32.mrf.mxu1  ;;  %v2312_v59 = vpop.f32.mrf.mxu0 }
 0x651   : > { %v2411_v62 = vmul.f32 %v3453_v55, %v2266_v58  ;;  %v2413_v63 = vmul.f32 %v3455_v57, %v2312_v59  ;;  %v3466_v59 = vld [vmem:[%s3957_s6] sm:$0xff]  ;;  %s3132_s6 = sshll.u32 %s3838_s1, 7  ;;  %s2931_s1 = scalar_lea.sflag [#allocation4], %s669_s28 }
 0x652   : > { %v3235_v1 = vpop.f32.mrf.mxu1  ;;  %v3241_v0 = vpop.f32.mrf.mxu0  ;;  %s4270_s29 = scalar_lea.hbm %s4374_s26, %s3132_s6 }
 0x653   : > { %v2418_v2 = vpack.c.bf16 %v2411_v62, %v2411_v62  ;;  %v2419_v3 = vpack.c.bf16 %v2413_v63, %v2413_v63  ;;  %v3457_v13 = vpop.eup %3456 }
 0x654   : > { %v2269_v6 = vpop.f32.mrf.mxu1  ;;  %v2315_v7 = vpop.f32.mrf.mxu0 }
 0x655   : > { %3258 = vmatmul.mubr.msk.bf16.vlgmr.msra.gmra.mxu1 %vm2000_vm3, %v2418_v2  ;;  %3264 = vmatmul.mubr.msk.bf16.vlgmr.msra.gmra.mxu0 %vm2000_vm3, %v2419_v3  ;;  %v3459_v15 = vpop.eup %3458  ;;  %v3433_v6 = vld [vmem:[#allocation11] sm:$0xff]  }
 0x656   : > { %v3236_v9 = vpop.f32.mrf.mxu1  ;;  %v3242_v30 = vpop.f32.mrf.mxu0  ;;  %3268 = vmatpush3.bf16.msra.mxu1 %v2522_v4  ;;  %3274 = vmatpush3.bf16.msra.mxu0 %v2568_v5  ;;  %v3432_v5 = vld [vmem:[#allocation11 + $0x8] sm:$0xff]  }
 0x657   : > { %3269 = vmatprep.mubr.msk.bf16.mxu1 %vm3710_vm1, %v3709_v8  ;;  %3275 = vmatprep.mubr.msk.bf16.mxu0 %vm3710_vm1, %v3709_v8 }
 0x658   : > { %3279 = vmatprep.subr.bf16.mxu1 %v3709_v8  ;;  %3287 = vmatprep.subr.bf16.mxu0 %v3709_v8 }
 0x67c   : > { %v2358_v14 = vpop.f32.mrf.mxu1 }
 0x67d   : > { %v2415_v16 = vmul.f32 %v3457_v13, %v2358_v14  ;;  %v2404_v17 = vpop.f32.mrf.mxu0  ;;  %v3117_v14 = vld [vmem:[%s4326_s14] ss:$0 sm:$0xff] }
 0x67e   : > { %v2417_v36 = vmul.f32 %v3459_v15, %v2404_v17  ;;  %v3247_v18 = vpop.f32.mrf.mxu1 }
 0x67f   : > { %v2420_v10 = vpack.c.bf16 %v2415_v16, %v2415_v16  ;;  %v3253_v19 = vpop.f32.mrf.mxu0  ;;  %v3435_v18 = vld [vmem:[%s4329_s17 + $0x30] sm:$0xff]  }
 0x680   : > { %v2421_v20 = vpack.c.bf16 %v2417_v36, %v2417_v36  ;;  %v2361_v21 = vpop.f32.mrf.mxu1  ;;  %v3434_v36 = vld [vmem:[%s4329_s17 + $0x38] sm:$0xff]   ;;  %v3437_v19 = vld [vmem:[%s4329_s17 + $0x20] sm:$0xff]  }
 0x681   : > { %v2407_v50 = vpop.f32.mrf.mxu0  ;;  %3270 = vmatmul.mubr.msk.bf16.vlgmr.msra.gmra.mxu1 %vm2000_vm3, %v2420_v10  ;;  %v3436_v10 = vld [vmem:[%s4329_s17 + $0x28] sm:$0xff]   ;;  %v3439_v21 = vld [vmem:[%s4329_s17 + $0x10] sm:$0xff]  }
 0x682   : > { %3276 = vmatmul.mubr.msk.bf16.vlgmr.msra.gmra.mxu0 %vm2000_vm3, %v2421_v20  ;;  %v3248_v22 = vpop.f32.mrf.mxu1  ;;  %3283 = vmatprep.mubr.msk.bf16.mxu1 %vm3710_vm1, %v3709_v8  ;;  %v3438_v20 = vld [vmem:[%s4329_s17 + $0x18] sm:$0xff]   ;;  %v3440_v50 = vld [vmem:[%s4329_s17 + $0x8] sm:$0xff]  }
 0x683   : > { %v3254_v23 = vpop.f32.mrf.mxu0  ;;  %3291 = vmatprep.mubr.msk.bf16.mxu0 %vm3710_vm1, %v3709_v8  ;;  %3280 = vmatpush3.bf16.msra.mxu1 %v3430_v24  ;;  %v3441_v22 = vld [vmem:[%s4329_s17] sm:$0xff]  }
 0x684   : > { %3281 = vmatprep.subr.bf16.mxu1 %v3709_v8  ;;  %3288 = vmatpush3.bf16.msra.mxu0 %v3432_v5  ;;  %v3118_v23 = vld [vmem:[%s4328_s16] ss:$0 sm:$0xff] }
 0x685   : > { %3289 = vmatprep.subr.bf16.mxu0 %v3709_v8 }
 0x687   : > { %3282 = vmatpush3.bf16.msra.mxu1 %v3431_v25 }
 0x688   : > { %3295 = vmatprep.subr.bf16.mxu1 %v3709_v8  ;;  %3290 = vmatpush3.bf16.msra.mxu0 %v3433_v6 }
 0x715   : > { %v2466_v26 = vpop.f32.mrf.mxu1  ;;  %v2512_v27 = vpop.f32.mrf.mxu0 }
 0x716   : > { %v2610_v37 = vsel %vm680_vm0, %v2466_v26, 0.0  ;;  %v2611_v38 = vsel %vm680_vm0, %v2512_v27, 0.0 }
 0x717   : > { %v3259_v31 = vpop.f32.mrf.mxu1  ;;  %v3265_v32 = vpop.f32.mrf.mxu0  ;;  %v2612_v39 = vadd.f32 %v2611_v38, %v2610_v37 }
 0x719   : > { %v2469_v33 = vpop.f32.mrf.mxu1  ;;  %v2515_v34 = vpop.f32.mrf.mxu0 }
 0x71b   : > { %v3260_v35 = vpop.f32.mrf.mxu1  ;;  %v3266_v56 = vpop.f32.mrf.mxu0 }
 0x741   : > { %v2558_v40 = vpop.f32.mrf.mxu1 }
 0x742   : > { %v2613_v41 = vsel %vm680_vm0, %v2558_v40, 0.0  ;;  %v2604_v42 = vpop.f32.mrf.mxu0 }
 0x743   : > { %v2614_v43 = vadd.f32 %v2613_v41, %v2612_v39  ;;  %v3271_v44 = vpop.f32.mrf.mxu1  ;;  %v2615_v45 = vsel %vm680_vm0, %v2604_v42, 0.0 }
 0x744   : > { %v3277_v47 = vpop.f32.mrf.mxu0 }
 0x745   : > { %v2616_v48 = vadd.f32 %v2615_v45, %v2614_v43  ;;  %v2561_v49 = vpop.f32.mrf.mxu1 }
 0x746   : > { %v2607_v28 = vpop.f32.mrf.mxu0 }
 0x747   : > { %v2624_v29 = vadd.f32 %v3111_v46, %v2616_v48  ;;  %v3272_v51 = vpop.f32.mrf.mxu1 }
 0x748   : > { %v3278_v52 = vpop.f32.mrf.mxu0 }
 0x749   : > { %v2625_v53 = vpack.c.bf16 %v2624_v29, %v2624_v29 }
 0x74b   : > { %3284 = vmatmul.mubr.msk.bf16.vlgmr.msra.gmra.mxu1 %vm680_vm0, %v2625_v53 }
 0x74c   : > { %3311 = vmatprep.mubr.msk.bf16.mxu1 %vm3710_vm1, %v3709_v8  ;;  %3296 = vmatpush3.bf16.msra.mxu1 %v3434_v36 }
 0x74d   : > { %3297 = vmatprep.subr.bf16.mxu1 %v3709_v8 }
 0x750   : > { %3298 = vmatpush3.bf16.msra.mxu1 %v3435_v18 }
 0x751   : > { %3299 = vmatprep.subr.bf16.mxu1 %v3709_v8 }
 0x754   : > { %3300 = vmatpush3.bf16.msra.mxu1 %v3436_v10 }
 0x755   : > { %3301 = vmatprep.subr.bf16.mxu1 %v3709_v8 }
 0x758   : > { %3302 = vmatpush3.bf16.msra.mxu1 %v3437_v19 }
 0x759   : > { %3303 = vmatprep.subr.bf16.mxu1 %v3709_v8 }
 0x75c   : > { %3304 = vmatpush3.bf16.msra.mxu1 %v3438_v20 }
 0x75d   : > { %3305 = vmatprep.subr.bf16.mxu1 %v3709_v8 }
 0x760   : > { %3306 = vmatpush3.bf16.msra.mxu1 %v3439_v21 }
 0x761   : > { %3307 = vmatprep.subr.bf16.mxu1 %v3709_v8 }
 0x764   : > { %3308 = vmatpush3.bf16.msra.mxu1 %v3440_v50 }
 0x765   : > { %3309 = vmatprep.subr.bf16.mxu1 %v3709_v8 }
 0x768   : > { %3310 = vmatpush3.bf16.msra.mxu1 %v3441_v22 }
 0x80b   : > { %v2686_v55 = vpop.f32.mrf.mxu1 }
 0x80c   : > { %v2687_v57 = vadd.f32 %v3112_v54, %v2686_v55 }
 0x80d   : > { %v3285_v58 = vpop.f32.mrf.mxu1 }
 0x80e   : > { %v4213_v60 = vadd.f32 %v3466_v59, %v2687_v57  ;;  %v3122_v57 = vld [vmem:[%s4330_s18] ss:$0 sm:$0xff] }
 0x80f   : > { %v2689_v61 = vpop.f32.mrf.mxu1 }
 0x810   : > { %v2695_v62 = vsel %vm680_vm0, %v4213_v60, 0.0 }
 0x811   : > { %2696 = vadd.xlane.f32.xlu1 %v2695_v62  ;;  %v3286_v63 = vpop.f32.mrf.mxu1 }
 0x89a   : > { %v2697_v1 = vpop.xlane.xlu1 %2696 }
 0x89b   : > { %v2698_v0 = vmul.f32 0.03125, %v2697_v1 }
 0x89d   : > { %v2699_v2 = vsub.f32 %v4213_v60, %v2698_v0 }
 0x89f   : > { %v2700_v3 = vmul.f32 %v2699_v2, %v2699_v2 }
 0x8a1   : > { %v2701_v4 = vsel %vm680_vm0, %v2700_v3, 0.0 }
 0x8a2   : > { %2702 = vadd.xlane.f32.xlu0 %v2701_v4 }
 0x92b   : > { %v2703_v7 = vpop.xlane.xlu0 %2702 }
 0x92c   : > { %v2704_v9 = vmul.f32 0.03125, %v2703_v7 }
 0x92e   : > { %v2705_v30 = vadd.f32 1e-05, %v2704_v9 }
 0x930   : > { %3460 = vrsqrt.f32 %v2705_v30 }
 0x93d   : > { %v3461_v11 = vpop.eup %3460 }
 0x93e   : > { %v2707_v13 = vmul.f32 %v3461_v11, %v2699_v2 }
 0x940   : > { %v2714_v15 = vmul.f32 %v3116_v12, %v2707_v13 }
 0x942   : > { %v2721_v16 = vadd.f32 %v3117_v14, %v2714_v15 }
 0x944   : > { %v2722_v17 = vpack.c.bf16 %v2721_v16, %v2721_v16 }
 0x946   : > { %3292 = vmatmul.mubr.msk.bf16.vlgmr.msra.gmra.mxu0 %vm680_vm0, %v2722_v17 }
 0xa06   : > { %v2783_v24 = vpop.f32.mrf.mxu0 }
 0xa07   : > { %v2784_v25 = vadd.f32 %v3118_v23, %v2783_v24 }
 0xa08   : > { %v3293_v26 = vpop.f32.mrf.mxu0 }
 0xa09   : > { %v2790_v27 = vmul.f32 0.70710677, %v2784_v25  ;;  %v2789_v52 = vmul.f32 0.5, %v2784_v25 }
 0xa0a   : > { %v2786_v31 = vpop.f32.mrf.mxu0 }
 0xa0b   : > { %v2791_v32 = vand.u32 2147483647, %v2790_v27  ;;  %vm2811_vm4 = vcmp.ge.f32.partialorder %v2790_v27, 0.0 }
 0xa0c   : > { %v3294_v33 = vpop.f32.mrf.mxu0 }
 0xa0d   : > { %v2792_v34 = vmul.f32 0.3275911, %v2791_v32  ;;  %v2805_v8 = vsub.f32 0.0, %v2791_v32 }
 0xa0f   : > { %v2793_v35 = vadd.f32 1.0, %v2792_v34  ;;  %v2806_v56 = vmul.f32 %v2805_v8, %v2791_v32 }
 0xa11   : > { %3462 = vrcp.f32 %v2793_v35  ;;  %v2807_v39 = vmul.f32 1.442695, %v2806_v56 }
 0xa13   : > { %3464 = vpow2.f32 %v2807_v39 }
 0xa1e   : > { %v3463_v37 = vpop.eup %3462 }
 0xa1f   : > { %v2796_v38 = vmul.f32 1.0614054, %v3463_v37 }
 0xa20   : > { %v3465_v48 = vpop.eup %3464 }
 0xa21   : > { %v2797_v40 = vadd.f32 -1.4531521, %v2796_v38 }
 0xa23   : > { %v2798_v41 = vmul.f32 %v3463_v37, %v2797_v40 }
 0xa25   : > { %v2799_v42 = vadd.f32 1.4214138, %v2798_v41 }
 0xa27   : > { %v2800_v43 = vmul.f32 %v3463_v37, %v2799_v42 }
 0xa29   : > { %v2801_v44 = vadd.f32 -0.28449672, %v2800_v43 }
 0xa2b   : > { %v2802_v45 = vmul.f32 %v3463_v37, %v2801_v44 }
 0xa2d   : > { %v2803_v46 = vadd.f32 0.2548296, %v2802_v45 }
 0xa2f   : > { %v2804_v47 = vmul.f32 %v3463_v37, %v2803_v46 }
 0xa31   : > { %v2809_v49 = vmul.f32 %v3465_v48, %v2804_v47 }
 0xa33   : > { %v2810_v28 = vsub.f32 1.0, %v2809_v49 }
 0xa35   : > { %v2812_v29 = vsub.f32 0.0, %v2810_v28 }
 0xa37   : > { %v2813_v51 = vsel %vm2811_vm4, %v2810_v28, %v2812_v29 }
 0xa38   : > { %v2814_v53 = vadd.f32 1.0, %v2813_v51 }
 0xa3a   : > { %v2815_v54 = vmul.f32 %v2814_v53, %v2789_v52 }
 0xa3c   : > { %v2816_v55 = vpack.c.bf16 %v2815_v54, %v2815_v54 }
 0xa3e   : > { %3312 = vmatmul.mubr.bf16.vlgmr.msra.gmra.mxu1 %v2816_v55 }
 0xafe   : > { %v2922_v58 = vpop.f32.mrf.mxu1 }
 0xaff   : > { %v2923_v59 = vadd.f32 %v3122_v57, %v2922_v58 }
 0xb00   : > { %v3313_v61 = vpop.f32.mrf.mxu1 }
 0xb01   : > { %v2928_v62 = vadd.f32 %v2923_v59, %v4213_v60 }
 0xb02   : > { %v2925_v63 = vpop.f32.mrf.mxu1 }
 0xb03   : > { %2929 = vst.msk [vmem:[%s671_s21] sm:$0xff] %vm680_vm0, %v2928_v62 }
 0xb04   : > { %v3314_v1 = vpop.f32.mrf.mxu1 }
 0xb05   : > { %3636 = shalt.err (!%p3633_p4)
}
 0xb06   : > { %s3637_s20 = scalar_lea.hbm %s4270_s29, 128  ;;  %s3641_s21 = scalar_lea.hbm %s4374_s26, 256 }
 0xb07   : > { %p3638_p7 = scmp.ne.s32.totalorder %s4270_s29, %s3637_s20  ;;  %p3642_p11 = scmp.lt.s32.totalorder %s4270_s29, %s4374_s26 }
 0xb08   : > { %p3643_p0 = scmp.lt.s32.totalorder %s3641_s21, %s3637_s20 }
 0xb09   : > { %p3639_p8 = pnand %p3638_p7, %p4375_p9 }
 0xb0a   : > { %p3644_p1 = por %p3643_p0, %p3642_p11 }
 0xb0b   : > { %p3640_p12 = pneg %p3639_p8 }
 0xb0d   : > { %p3645_p2 = pnand %p3644_p1, %p3640_p12 }
 0xb0f   : > { %3648 = shalt.err (!%p3645_p2)
}
 0xb10   : > { %3339 = dma.vmem_to_hbm [thread:$0]  (%p4375_p9), %s4272_s2, 128, %s4270_s29, %s2931_s1  }
 0xb11 PF: > { %s4376_s23 = sld [smem:[#allocation21_spill]] }
 0xb12   : > { %s4377_s25 = sld [smem:[#allocation19_spill]] }
 0xb13   : > { %s4378_s0 = sld [smem:[#allocation24_spill]] }
 0xb17   : > { %p3376_p3 = scmp.ge.s32.totalorder %s4376_s23, 2 }
 0xb18   : > { %s2956_s19 = sand.u32 1, %s4377_s25  }
 0xb19   : > { %p4379_p5 = scmp.ne.s32.totalorder %s4378_s0, 0  ;;  %s2957_s28 = scalar_lea.sflag [#allocation4], %s2956_s19 }
 0xb1b   : > { %p3361_p6 = pnand %p3376_p3, %p4379_p5 }
 0xb1d   : > { %p3362_p10 = pneg %p3361_p6 }
 0xb1f   : > { %3682 = dma.done.wait (%p3362_p10), %s2957_s28, 128  }
 0xb20   : > { %3684 = vsyncadd (%p3362_p10), %s2957_s28, 4294967168  ;;  %s4380_s21 = sld [smem:[#allocation22_spill]]  ;;  %s4383_s0 = smov %s3691_s30 }
 0xb21   : > { %s4381_s20 = sld [smem:[#allocation20_spill]] }
 0xb22   : > { %s4382_s6 = sld [smem:[#allocation23_spill]] }
 0xb26   : > { %p33_p13 = scmp.ge.s32.totalorder %s4380_s21, 4  }
 0xb27   : > { %s4384_s30 = smov %s4381_s20 }
 0xb28   : > { %s4385_s20 = smov %s4382_s6  ;;  %35 = sbr.rel (!%p33_p13) target bundleno = 14 (0xe), region = 156 }
 0xb2d   :  { %2962 = vsyncpa [#allocation3], 1 }
 0xb2e   :  { %2964 = vsyncpa [#allocation3 + $0x1], 1 }
 0xb2f   :  { %2965 = vsyncpa [#allocation6], 1 }
 0xb30   :  { %2966 = vsyncpa [#allocation9], 1 }
 0xb31   :  { %2967 = vsyncpa [#allocation12], 1 }
 0xb32   :  { %2968 = vsyncpa [#allocation4], 1 }
 0xb33   :  { %2970 = vsyncpa [#allocation4 + $0x1], 1 }

</bundles_post_ra>
